<compile_context>
chip_gen: v6e
topology: v6e:2x2x1
jax: 0.10.0
libtpu: 0.0.40
codegen_flags: <defaults>
</compile_context>

<pallas_src>
import math

import jax
import jax.numpy as jnp
from jax.experimental import pallas as pl
from jax.experimental.pallas import tpu as pltpu


# ---------------------- scaled-down ViT-B/32 visual config ------------------ #
IMG = 32          # image resolution   (CLIP: 224)
PATCH = 16        # patch size         (CLIP: 32)
IN_CH = 3
WIDTH = 64        # transformer width  (CLIP: 768)
HEADS = 4         # (CLIP: 12)
LAYERS = 2        # (CLIP: 12)
MLP_DIM = 4 * WIDTH
EMBED_DIM = 32    # output feature dim (CLIP: 512)
GRID_P = IMG // PATCH
NUM_PATCHES = GRID_P * GRID_P
SEQ = NUM_PATCHES + 1            # + class token
HEAD_DIM = WIDTH // HEADS
CPP = IN_CH * PATCH * PATCH      # im2col row length
LN_EPS = 1e-5


# ------------------------------ fused kernel -------------------------------- #

def _clip_encoder_kernel(
    # per-image input
    patch_ref,                       # (1, SEQ, CPP)  bf16  im2col patches (row 0 = zeros)
    # shared embedding params
    conv_w_ref,                      # (CPP, WIDTH)   bf16
    add_ref,                         # (SEQ, WIDTH)   f32   pos emb (+ cls emb on row 0)
    lnpre_g_ref, lnpre_b_ref,        # (1, WIDTH)     f32
    # per-layer stacked params, loaded in full (resident across the whole batch)
    ln1_g_ref, ln1_b_ref,            # (LAYERS, 1, WIDTH)
    qkv_w_ref,                       # (LAYERS, WIDTH, 3*WIDTH) bf16
    qkv_b_ref,                       # (LAYERS, 1, 3*WIDTH)
    out_w_ref,                       # (LAYERS, WIDTH, WIDTH)   bf16
    out_b_ref,                       # (LAYERS, 1, WIDTH)
    ln2_g_ref, ln2_b_ref,            # (LAYERS, 1, WIDTH)
    fc_w_ref,                        # (LAYERS, WIDTH, MLP_DIM) bf16
    fc_b_ref,                        # (LAYERS, 1, MLP_DIM)
    proj_w_ref,                      # (LAYERS, MLP_DIM, WIDTH) bf16
    proj_b_ref,                      # (LAYERS, 1, WIDTH)
    # shared head params
    lnpost_g_ref, lnpost_b_ref,      # (1, WIDTH)
    vproj_ref,                       # (WIDTH, EMBED_DIM) bf16
    # output
    feat_ref,                        # (1, 1, EMBED_DIM) f32
):
    def layer_norm(x, g, b):
        mu = jnp.mean(x, axis=-1, keepdims=True)
        var = jnp.mean(jnp.square(x - mu), axis=-1, keepdims=True)
        return (x - mu) * jax.lax.rsqrt(var + LN_EPS) * g + b

    def mxu_dot(x_f32, w_bf16):
        # bf16 x bf16 on the MXU with f32 accumulation.
        return jnp.dot(x_f32.astype(jnp.bfloat16), w_bf16,
                       preferred_element_type=jnp.float32)

    scale = 1.0 / math.sqrt(HEAD_DIM)

    # ---- patch embedding + cls/pos embedding + ln_pre ----------------------- #
    emb = jnp.dot(patch_ref[0], conv_w_ref[...],
                  preferred_element_type=jnp.float32)                 # (SEQ, W)
    x = layer_norm(emb + add_ref[...], lnpre_g_ref[...], lnpre_b_ref[...])

    # ---- residual attention blocks (static unroll over LAYERS) -------------- #
    for l in range(LAYERS):
        # attention sub-block
        xn = layer_norm(x, ln1_g_ref[l], ln1_b_ref[l])
        qkv = mxu_dot(xn, qkv_w_ref[l]) + qkv_b_ref[l]                # (SEQ, 3W)
        out_w = out_w_ref[l]                                          # (W, W) bf16

        attn = jnp.zeros((SEQ, WIDTH), jnp.float32)
        for h in range(HEADS):                                        # static unroll
            lo = h * HEAD_DIM
            hi = lo + HEAD_DIM
            q = qkv[:, lo:hi]
            k = qkv[:, WIDTH + lo:WIDTH + hi]
            v = qkv[:, 2 * WIDTH + lo:2 * WIDTH + hi]
            s = jax.lax.dot_general(q, k, (((1,), (1,)), ((), ())),
                                    preferred_element_type=jnp.float32) * scale
            s = s - jnp.max(s, axis=-1, keepdims=True)
            p = jnp.exp(s)
            p = p / jnp.sum(p, axis=-1, keepdims=True)
            o_h = jnp.dot(p, v, preferred_element_type=jnp.float32)   # (SEQ, Dh)
            # concat(heads) @ Wo  ==  sum_h  head_h @ Wo[h*Dh:(h+1)*Dh, :]
            attn = attn + mxu_dot(o_h, out_w[lo:hi, :])
        x = x + attn + out_b_ref[l]                                   # fused residual

        # MLP sub-block (QuickGELU fused)
        xn = layer_norm(x, ln2_g_ref[l], ln2_b_ref[l])
        h_mid = mxu_dot(xn, fc_w_ref[l]) + fc_b_ref[l]
        h_mid = h_mid * jax.nn.sigmoid(1.702 * h_mid)                 # QuickGELU
        x = x + mxu_dot(h_mid, proj_w_ref[l]) + proj_b_ref[l]         # fused residual

    # ---- ln_post on the class token + visual projection --------------------- #
    cls_tok = layer_norm(x[0:1, :], lnpost_g_ref[...], lnpost_b_ref[...])
    feat_ref[0] = jnp.dot(cls_tok.astype(jnp.bfloat16), vproj_ref[...],
                          preferred_element_type=jnp.float32)


# ------------------------------ kernel wrapper ------------------------------- #

def clip_encode_pallas(patches, p):
    """patches: (N, SEQ, CPP) bf16  ->  (N, 1, EMBED_DIM) f32."""
    n_imgs = patches.shape[0]

    def shared(shape):
        nd = len(shape)
        return pl.BlockSpec(shape, lambda n, _nd=nd: (0,) * _nd)

    in_specs = [
        pl.BlockSpec((1, SEQ, CPP), lambda n: (n, 0, 0)),      # patches (per image)
        shared((CPP, WIDTH)),                                  # conv_w
        shared((SEQ, WIDTH)),                                  # pos (+cls) add term
        shared((1, WIDTH)), shared((1, WIDTH)),                # ln_pre g, b
        shared((LAYERS, 1, WIDTH)), shared((LAYERS, 1, WIDTH)),        # ln1 g, b
        shared((LAYERS, WIDTH, 3 * WIDTH)),                            # qkv_w
        shared((LAYERS, 1, 3 * WIDTH)),                                # qkv_b
        shared((LAYERS, WIDTH, WIDTH)),                                # out_w
        shared((LAYERS, 1, WIDTH)),                                    # out_b
        shared((LAYERS, 1, WIDTH)), shared((LAYERS, 1, WIDTH)),        # ln2 g, b
        shared((LAYERS, WIDTH, MLP_DIM)),                              # fc_w
        shared((LAYERS, 1, MLP_DIM)),                                  # fc_b
        shared((LAYERS, MLP_DIM, WIDTH)),                              # proj_w
        shared((LAYERS, 1, WIDTH)),                                    # proj_b
        shared((1, WIDTH)), shared((1, WIDTH)),                # ln_post g, b
        shared((WIDTH, EMBED_DIM)),                            # visual_proj
    ]

    return pl.pallas_call(
        _clip_encoder_kernel,
        out_shape=jax.ShapeDtypeStruct((n_imgs, 1, EMBED_DIM), jnp.float32),
        grid=(n_imgs,),
        in_specs=in_specs,
        out_specs=pl.BlockSpec((1, 1, EMBED_DIM), lambda n: (n, 0, 0)),
        compiler_params=pltpu.CompilerParams(
            dimension_semantics=("parallel",)),
    )(
        patches,
        p['conv_w_t'], p['add_term'], p['ln_pre_g'], p['ln_pre_b'],
        p['ln1_g'], p['ln1_b'], p['qkv_w'], p['qkv_b'], p['out_w'], p['out_b'],
        p['ln2_g'], p['ln2_b'], p['fc_w'], p['fc_b'], p['proj_w'], p['proj_b'],
        p['ln_post_g'], p['ln_post_b'], p['visual_proj'],
    )


# ------------------------------ model definition ----------------------------- #

def init_params(key):
    # TODO(synk): the original module loads pretrained ViT-B/32 weights via
    # clip.load(); here the scaled-down encoder is randomly initialized in-script.
    ks = iter(jax.random.split(key, 32))
    std = 0.02

    def nrm(shape, scale=std):
        return scale * jax.random.normal(next(ks), shape, dtype=jnp.float32)

    return {
        'conv_w': nrm((WIDTH, IN_CH, PATCH, PATCH)),   # no bias, as in CLIP
        'class_embedding': nrm((WIDTH,)),
        'pos_embedding': nrm((SEQ, WIDTH)),
        'ln_pre_g': jnp.ones((WIDTH,), jnp.float32),
        'ln_pre_b': jnp.zeros((WIDTH,), jnp.float32),
        'ln_post_g': jnp.ones((WIDTH,), jnp.float32),
        'ln_post_b': jnp.zeros((WIDTH,), jnp.float32),
        'visual_proj': nrm((WIDTH, EMBED_DIM)),
        # transformer blocks, stacked along a leading layer axis
        'ln1_g': jnp.ones((LAYERS, 1, WIDTH), jnp.float32),
        'ln1_b': jnp.zeros((LAYERS, 1, WIDTH), jnp.float32),
        'qkv_w': nrm((LAYERS, WIDTH, 3 * WIDTH)),
        'qkv_b': jnp.zeros((LAYERS, 1, 3 * WIDTH), jnp.float32),
        'out_w': nrm((LAYERS, WIDTH, WIDTH)),
        'out_b': jnp.zeros((LAYERS, 1, WIDTH), jnp.float32),
        'ln2_g': jnp.ones((LAYERS, 1, WIDTH), jnp.float32),
        'ln2_b': jnp.zeros((LAYERS, 1, WIDTH), jnp.float32),
        'fc_w': nrm((LAYERS, WIDTH, MLP_DIM)),
        'fc_b': jnp.zeros((LAYERS, 1, MLP_DIM), jnp.float32),
        'proj_w': nrm((LAYERS, MLP_DIM, WIDTH)),
        'proj_b': jnp.zeros((LAYERS, 1, WIDTH), jnp.float32),
    }


def prepare_params(params):
    """Lay parameters out the way the fused kernel wants them (bf16 weights)."""
    bf16 = jnp.bfloat16
    conv_w_t = params['conv_w'].reshape(WIDTH, CPP).T            # (CPP, WIDTH)
    # Token 0's im2col row is zero, so fold the class embedding into the additive term.
    add_term = params['pos_embedding'].at[0, :].add(params['class_embedding'])
    return {
        'conv_w_t': conv_w_t.astype(bf16),
        'add_term': add_term,
        'ln_pre_g': params['ln_pre_g'].reshape(1, WIDTH),
        'ln_pre_b': params['ln_pre_b'].reshape(1, WIDTH),
        'ln_post_g': params['ln_post_g'].reshape(1, WIDTH),
        'ln_post_b': params['ln_post_b'].reshape(1, WIDTH),
        'visual_proj': params['visual_proj'].astype(bf16),
        'ln1_g': params['ln1_g'], 'ln1_b': params['ln1_b'],
        'qkv_w': params['qkv_w'].astype(bf16), 'qkv_b': params['qkv_b'],
        'out_w': params['out_w'].astype(bf16), 'out_b': params['out_b'],
        'ln2_g': params['ln2_g'], 'ln2_b': params['ln2_b'],
        'fc_w': params['fc_w'].astype(bf16), 'fc_b': params['fc_b'],
        'proj_w': params['proj_w'].astype(bf16), 'proj_b': params['proj_b'],
    }


@jax.jit
def clip_module_forward(images, prepared):
    """images: (b, e, C, H, W) -> (1, b*e, EMBED_DIM), mirroring CLIPModule.forward."""
    b, e, c, h, w = images.shape
    n = b * e
    imgs = images.reshape(n, c, h, w).astype(jnp.float32)   # 'b e c h w -> (b e) c h w'
    # Stride==kernel conv expressed as im2col; the 32x32 relayout is negligible glue.
    # TODO(synk): at real 224x224 resolution, express this im2col with a BlockSpec
    # index_map (grid over patches) instead of an XLA transpose.
    x = imgs.reshape(n, IN_CH, GRID_P, PATCH, GRID_P, PATCH)
    x = x.transpose(0, 2, 4, 1, 3, 5).reshape(n, NUM_PATCHES, CPP)
    patches = jnp.concatenate(
        [jnp.zeros((n, 1, CPP), x.dtype), x], axis=1).astype(jnp.bfloat16)
    feats = clip_encode_pallas(patches, prepared)            # (n, 1, EMBED)
    return feats.reshape(1, n, EMBED_DIM)                    # '(b e) c -> b e c', b=1


# ----------------------------------- main ------------------------------------ #

if __name__ == "__main__":
    key = jax.random.PRNGKey(0)
    pkey, xkey = jax.random.split(key)

    prepared = prepare_params(init_params(pkey))
    # sample['image']: (b, e, C, H, W) = (1, 2, 3, 32, 32), NCHW like PyTorch.
    images = jax.random.normal(xkey, (1, 2, IN_CH, IMG, IMG), dtype=jnp.float32)

    out = clip_module_forward(images, prepared)
    jax.block_until_ready(out)

    assert out.shape == (1, 2, EMBED_DIM), out.shape
    assert out.dtype == jnp.float32
    assert bool(jnp.all(jnp.isfinite(out)))
    print("KERNEL_OK")
</pallas_src>

<mosaic_0001>
module attributes {stable_mosaic.version = 11 : i64} {
  func.func @_clip_encoder_kernel(%arg0: i32, %arg1: memref<1x5x768xbf16, #tpu.memory_space<vmem>>, %arg2: memref<768x64xbf16, #tpu.memory_space<vmem>>, %arg3: memref<5x64xf32, #tpu.memory_space<vmem>>, %arg4: memref<1x64xf32, #tpu.memory_space<vmem>>, %arg5: memref<1x64xf32, #tpu.memory_space<vmem>>, %arg6: memref<2x1x64xf32, #tpu.memory_space<vmem>>, %arg7: memref<2x1x64xf32, #tpu.memory_space<vmem>>, %arg8: memref<2x64x192xbf16, #tpu.memory_space<vmem>>, %arg9: memref<2x1x192xf32, #tpu.memory_space<vmem>>, %arg10: memref<2x64x64xbf16, #tpu.memory_space<vmem>>, %arg11: memref<2x1x64xf32, #tpu.memory_space<vmem>>, %arg12: memref<2x1x64xf32, #tpu.memory_space<vmem>>, %arg13: memref<2x1x64xf32, #tpu.memory_space<vmem>>, %arg14: memref<2x64x256xbf16, #tpu.memory_space<vmem>>, %arg15: memref<2x1x256xf32, #tpu.memory_space<vmem>>, %arg16: memref<2x256x64xbf16, #tpu.memory_space<vmem>>, %arg17: memref<2x1x64xf32, #tpu.memory_space<vmem>>, %arg18: memref<1x64xf32, #tpu.memory_space<vmem>>, %arg19: memref<1x64xf32, #tpu.memory_space<vmem>>, %arg20: memref<64x32xbf16, #tpu.memory_space<vmem>>, %arg21: memref<1x1x32xf32, #tpu.memory_space<vmem>>) attributes {dimension_semantics = [#tpu.dimension_semantics<parallel>], iteration_bounds = array<i64: 2>, scalar_prefetch = 0 : i64, scratch_operands = 0 : i64, tpu.core_type = #tpu.core_type<tc>, window_params = [{transform_indices = @transform_0, window_bounds = array<i64: 1, 5, 768>}, {pipeline_mode = #tpu.pipeline_mode<synchronous>, transform_indices = @transform_1, window_bounds = array<i64: 768, 64>}, {pipeline_mode = #tpu.pipeline_mode<synchronous>, transform_indices = @transform_2, window_bounds = array<i64: 5, 64>}, {pipeline_mode = #tpu.pipeline_mode<synchronous>, transform_indices = @transform_3, window_bounds = array<i64: 1, 64>}, {pipeline_mode = #tpu.pipeline_mode<synchronous>, transform_indices = @transform_4, window_bounds = array<i64: 1, 64>}, {pipeline_mode = #tpu.pipeline_mode<synchronous>, transform_indices = @transform_5, window_bounds = array<i64: 2, 1, 64>}, {pipeline_mode = #tpu.pipeline_mode<synchronous>, transform_indices = @transform_6, window_bounds = array<i64: 2, 1, 64>}, {pipeline_mode = #tpu.pipeline_mode<synchronous>, transform_indices = @transform_7, window_bounds = array<i64: 2, 64, 192>}, {pipeline_mode = #tpu.pipeline_mode<synchronous>, transform_indices = @transform_8, window_bounds = array<i64: 2, 1, 192>}, {pipeline_mode = #tpu.pipeline_mode<synchronous>, transform_indices = @transform_9, window_bounds = array<i64: 2, 64, 64>}, {pipeline_mode = #tpu.pipeline_mode<synchronous>, transform_indices = @transform_10, window_bounds = array<i64: 2, 1, 64>}, {pipeline_mode = #tpu.pipeline_mode<synchronous>, transform_indices = @transform_11, window_bounds = array<i64: 2, 1, 64>}, {pipeline_mode = #tpu.pipeline_mode<synchronous>, transform_indices = @transform_12, window_bounds = array<i64: 2, 1, 64>}, {pipeline_mode = #tpu.pipeline_mode<synchronous>, transform_indices = @transform_13, window_bounds = array<i64: 2, 64, 256>}, {pipeline_mode = #tpu.pipeline_mode<synchronous>, transform_indices = @transform_14, window_bounds = array<i64: 2, 1, 256>}, {pipeline_mode = #tpu.pipeline_mode<synchronous>, transform_indices = @transform_15, window_bounds = array<i64: 2, 256, 64>}, {pipeline_mode = #tpu.pipeline_mode<synchronous>, transform_indices = @transform_16, window_bounds = array<i64: 2, 1, 64>}, {pipeline_mode = #tpu.pipeline_mode<synchronous>, transform_indices = @transform_17, window_bounds = array<i64: 1, 64>}, {pipeline_mode = #tpu.pipeline_mode<synchronous>, transform_indices = @transform_18, window_bounds = array<i64: 1, 64>}, {pipeline_mode = #tpu.pipeline_mode<synchronous>, transform_indices = @transform_19, window_bounds = array<i64: 64, 32>}, {transform_indices = @transform_20, window_bounds = array<i64: 1, 1, 32>}]} {
    %c0 = arith.constant 0 : index
    %c0_0 = arith.constant 0 : index
    %c0_1 = arith.constant 0 : index
    %0 = vector.load %arg1[%c0, %c0_0, %c0_1] : memref<1x5x768xbf16, #tpu.memory_space<vmem>>, vector<1x5x768xbf16>
    %1 = vector.shape_cast %0 : vector<1x5x768xbf16> to vector<5x768xbf16>
    %c0_2 = arith.constant 0 : index
    %c0_3 = arith.constant 0 : index
    %2 = vector.load %arg2[%c0_2, %c0_3] : memref<768x64xbf16, #tpu.memory_space<vmem>>, vector<768x64xbf16>
    %cst = arith.constant dense<0.000000e+00> : vector<5x64xf32>
    %3 = tpu.matmul %1, %2, %cst {dimension_numbers = #tpu.dot_dimension_numbers<[1], [0], [0], [1], [0, 0, 1, 1], [], []>} : vector<5x768xbf16>, vector<768x64xbf16>, vector<5x64xf32> -> vector<5x64xf32>
    %c0_4 = arith.constant 0 : index
    %c0_5 = arith.constant 0 : index
    %4 = vector.load %arg3[%c0_4, %c0_5] : memref<5x64xf32, #tpu.memory_space<vmem>>, vector<5x64xf32>
    %5 = arith.addf %3, %4 : vector<5x64xf32>
    %c0_6 = arith.constant 0 : index
    %c0_7 = arith.constant 0 : index
    %6 = vector.load %arg4[%c0_6, %c0_7] : memref<1x64xf32, #tpu.memory_space<vmem>>, vector<1x64xf32>
    %c0_8 = arith.constant 0 : index
    %c0_9 = arith.constant 0 : index
    %7 = vector.load %arg5[%c0_8, %c0_9] : memref<1x64xf32, #tpu.memory_space<vmem>>, vector<1x64xf32>
    %cst_10 = arith.constant dense<0.000000e+00> : vector<5xf32>
    %8 = vector.multi_reduction <add>, %5, %cst_10 [1] : vector<5x64xf32> to vector<5xf32>
    %9 = vector.shape_cast %8 : vector<5xf32> to vector<5x1xf32>
    %cst_11 = arith.constant 6.400000e+01 : f32
    %10 = vector.broadcast %cst_11 : f32 to vector<5x1xf32>
    %11 = arith.divf %9, %10 : vector<5x1xf32>
    %12 = vector.broadcast %11 : vector<5x1xf32> to vector<5x64xf32>
    %13 = arith.subf %5, %12 : vector<5x64xf32>
    %14 = arith.mulf %13, %13 : vector<5x64xf32>
    %cst_12 = arith.constant dense<0.000000e+00> : vector<5xf32>
    %15 = vector.multi_reduction <add>, %14, %cst_12 [1] : vector<5x64xf32> to vector<5xf32>
    %16 = vector.shape_cast %15 : vector<5xf32> to vector<5x1xf32>
    %cst_13 = arith.constant 6.400000e+01 : f32
    %17 = vector.broadcast %cst_13 : f32 to vector<5x1xf32>
    %18 = arith.divf %16, %17 : vector<5x1xf32>
    %19 = vector.broadcast %11 : vector<5x1xf32> to vector<5x64xf32>
    %20 = arith.subf %5, %19 : vector<5x64xf32>
    %cst_14 = arith.constant 9.99999974E-6 : f32
    %21 = vector.broadcast %cst_14 : f32 to vector<5x1xf32>
    %22 = arith.addf %18, %21 : vector<5x1xf32>
    %23 = math.rsqrt %22 : vector<5x1xf32>
    %24 = vector.broadcast %23 : vector<5x1xf32> to vector<5x64xf32>
    %25 = arith.mulf %20, %24 : vector<5x64xf32>
    %26 = vector.broadcast %6 : vector<1x64xf32> to vector<5x64xf32>
    %27 = arith.mulf %25, %26 : vector<5x64xf32>
    %28 = vector.broadcast %7 : vector<1x64xf32> to vector<5x64xf32>
    %29 = arith.addf %27, %28 : vector<5x64xf32>
    %c0_15 = arith.constant 0 : index
    %c0_16 = arith.constant 0 : index
    %c0_17 = arith.constant 0 : index
    %30 = vector.load %arg6[%c0_15, %c0_16, %c0_17] : memref<2x1x64xf32, #tpu.memory_space<vmem>>, vector<1x1x64xf32>
    %31 = vector.shape_cast %30 : vector<1x1x64xf32> to vector<1x64xf32>
    %c0_18 = arith.constant 0 : index
    %c0_19 = arith.constant 0 : index
    %c0_20 = arith.constant 0 : index
    %32 = vector.load %arg7[%c0_18, %c0_19, %c0_20] : memref<2x1x64xf32, #tpu.memory_space<vmem>>, vector<1x1x64xf32>
    %33 = vector.shape_cast %32 : vector<1x1x64xf32> to vector<1x64xf32>
    %cst_21 = arith.constant dense<0.000000e+00> : vector<5xf32>
    %34 = vector.multi_reduction <add>, %29, %cst_21 [1] : vector<5x64xf32> to vector<5xf32>
    %35 = vector.shape_cast %34 : vector<5xf32> to vector<5x1xf32>
    %cst_22 = arith.constant 6.400000e+01 : f32
    %36 = vector.broadcast %cst_22 : f32 to vector<5x1xf32>
    %37 = arith.divf %35, %36 : vector<5x1xf32>
    %38 = vector.broadcast %37 : vector<5x1xf32> to vector<5x64xf32>
    %39 = arith.subf %29, %38 : vector<5x64xf32>
    %40 = arith.mulf %39, %39 : vector<5x64xf32>
    %cst_23 = arith.constant dense<0.000000e+00> : vector<5xf32>
    %41 = vector.multi_reduction <add>, %40, %cst_23 [1] : vector<5x64xf32> to vector<5xf32>
    %42 = vector.shape_cast %41 : vector<5xf32> to vector<5x1xf32>
    %cst_24 = arith.constant 6.400000e+01 : f32
    %43 = vector.broadcast %cst_24 : f32 to vector<5x1xf32>
    %44 = arith.divf %42, %43 : vector<5x1xf32>
    %45 = vector.broadcast %37 : vector<5x1xf32> to vector<5x64xf32>
    %46 = arith.subf %29, %45 : vector<5x64xf32>
    %cst_25 = arith.constant 9.99999974E-6 : f32
    %47 = vector.broadcast %cst_25 : f32 to vector<5x1xf32>
    %48 = arith.addf %44, %47 : vector<5x1xf32>
    %49 = math.rsqrt %48 : vector<5x1xf32>
    %50 = vector.broadcast %49 : vector<5x1xf32> to vector<5x64xf32>
    %51 = arith.mulf %46, %50 : vector<5x64xf32>
    %52 = vector.broadcast %31 : vector<1x64xf32> to vector<5x64xf32>
    %53 = arith.mulf %51, %52 : vector<5x64xf32>
    %54 = vector.broadcast %33 : vector<1x64xf32> to vector<5x64xf32>
    %55 = arith.addf %53, %54 : vector<5x64xf32>
    %c0_26 = arith.constant 0 : index
    %c0_27 = arith.constant 0 : index
    %c0_28 = arith.constant 0 : index
    %56 = vector.load %arg8[%c0_26, %c0_27, %c0_28] : memref<2x64x192xbf16, #tpu.memory_space<vmem>>, vector<1x64x192xbf16>
    %57 = vector.shape_cast %56 : vector<1x64x192xbf16> to vector<64x192xbf16>
    %58 = arith.truncf %55 : vector<5x64xf32> to vector<5x64xbf16>
    %cst_29 = arith.constant dense<0.000000e+00> : vector<5x192xf32>
    %59 = tpu.matmul %58, %57, %cst_29 {dimension_numbers = #tpu.dot_dimension_numbers<[1], [0], [0], [1], [0, 0, 1, 1], [], []>} : vector<5x64xbf16>, vector<64x192xbf16>, vector<5x192xf32> -> vector<5x192xf32>
    %c0_30 = arith.constant 0 : index
    %c0_31 = arith.constant 0 : index
    %c0_32 = arith.constant 0 : index
    %60 = vector.load %arg9[%c0_30, %c0_31, %c0_32] : memref<2x1x192xf32, #tpu.memory_space<vmem>>, vector<1x1x192xf32>
    %61 = vector.shape_cast %60 : vector<1x1x192xf32> to vector<1x192xf32>
    %62 = vector.broadcast %61 : vector<1x192xf32> to vector<5x192xf32>
    %63 = arith.addf %59, %62 : vector<5x192xf32>
    %c0_33 = arith.constant 0 : index
    %c0_34 = arith.constant 0 : index
    %c0_35 = arith.constant 0 : index
    %64 = vector.load %arg10[%c0_33, %c0_34, %c0_35] : memref<2x64x64xbf16, #tpu.memory_space<vmem>>, vector<1x64x64xbf16>
    %65 = vector.shape_cast %64 : vector<1x64x64xbf16> to vector<64x64xbf16>
    %cst_36 = arith.constant 0.000000e+00 : f32
    %66 = vector.broadcast %cst_36 : f32 to vector<5x64xf32>
    %67 = vector.extract_strided_slice %63 {offsets = [0, 0], sizes = [5, 16], strides = [1, 1]} : vector<5x192xf32> to vector<5x16xf32>
    %68 = vector.extract_strided_slice %63 {offsets = [0, 64], sizes = [5, 16], strides = [1, 1]} : vector<5x192xf32> to vector<5x16xf32>
    %69 = vector.extract_strided_slice %63 {offsets = [0, 128], sizes = [5, 16], strides = [1, 1]} : vector<5x192xf32> to vector<5x16xf32>
    %cst_37 = arith.constant dense<0.000000e+00> : vector<5x5xf32>
    %70 = tpu.matmul %67, %68, %cst_37 {dimension_numbers = #tpu.dot_dimension_numbers<[1], [1], [0], [0], [0, 0, 1, 0], [], []>} : vector<5x16xf32>, vector<5x16xf32>, vector<5x5xf32> -> vector<5x5xf32>
    %cst_38 = arith.constant 2.500000e-01 : f32
    %71 = vector.broadcast %cst_38 : f32 to vector<5x5xf32>
    %72 = arith.mulf %70, %71 : vector<5x5xf32>
    %cst_39 = arith.constant dense<0xFF800000> : vector<5xf32>
    %73 = vector.multi_reduction <maximumf>, %72, %cst_39 [1] : vector<5x5xf32> to vector<5xf32>
    %74 = vector.shape_cast %73 : vector<5xf32> to vector<5x1xf32>
    %75 = vector.broadcast %74 : vector<5x1xf32> to vector<5x5xf32>
    %76 = arith.subf %72, %75 : vector<5x5xf32>
    %77 = math.exp %76 : vector<5x5xf32>
    %cst_40 = arith.constant dense<0.000000e+00> : vector<5xf32>
    %78 = vector.multi_reduction <add>, %77, %cst_40 [1] : vector<5x5xf32> to vector<5xf32>
    %79 = vector.shape_cast %78 : vector<5xf32> to vector<5x1xf32>
    %80 = vector.broadcast %79 : vector<5x1xf32> to vector<5x5xf32>
    %81 = arith.divf %77, %80 : vector<5x5xf32>
    %cst_41 = arith.constant dense<0.000000e+00> : vector<5x16xf32>
    %82 = tpu.matmul %81, %69, %cst_41 {dimension_numbers = #tpu.dot_dimension_numbers<[1], [0], [0], [1], [0, 0, 1, 1], [], []>} : vector<5x5xf32>, vector<5x16xf32>, vector<5x16xf32> -> vector<5x16xf32>
    %83 = vector.extract_strided_slice %65 {offsets = [0, 0], sizes = [16, 64], strides = [1, 1]} : vector<64x64xbf16> to vector<16x64xbf16>
    %84 = arith.truncf %82 : vector<5x16xf32> to vector<5x16xbf16>
    %cst_42 = arith.constant dense<0.000000e+00> : vector<5x64xf32>
    %85 = tpu.matmul %84, %83, %cst_42 {dimension_numbers = #tpu.dot_dimension_numbers<[1], [0], [0], [1], [0, 0, 1, 1], [], []>} : vector<5x16xbf16>, vector<16x64xbf16>, vector<5x64xf32> -> vector<5x64xf32>
    %86 = arith.addf %66, %85 : vector<5x64xf32>
    %87 = vector.extract_strided_slice %63 {offsets = [0, 16], sizes = [5, 16], strides = [1, 1]} : vector<5x192xf32> to vector<5x16xf32>
    %88 = vector.extract_strided_slice %63 {offsets = [0, 80], sizes = [5, 16], strides = [1, 1]} : vector<5x192xf32> to vector<5x16xf32>
    %89 = vector.extract_strided_slice %63 {offsets = [0, 144], sizes = [5, 16], strides = [1, 1]} : vector<5x192xf32> to vector<5x16xf32>
    %cst_43 = arith.constant dense<0.000000e+00> : vector<5x5xf32>
    %90 = tpu.matmul %87, %88, %cst_43 {dimension_numbers = #tpu.dot_dimension_numbers<[1], [1], [0], [0], [0, 0, 1, 0], [], []>} : vector<5x16xf32>, vector<5x16xf32>, vector<5x5xf32> -> vector<5x5xf32>
    %cst_44 = arith.constant 2.500000e-01 : f32
    %91 = vector.broadcast %cst_44 : f32 to vector<5x5xf32>
    %92 = arith.mulf %90, %91 : vector<5x5xf32>
    %cst_45 = arith.constant dense<0xFF800000> : vector<5xf32>
    %93 = vector.multi_reduction <maximumf>, %92, %cst_45 [1] : vector<5x5xf32> to vector<5xf32>
    %94 = vector.shape_cast %93 : vector<5xf32> to vector<5x1xf32>
    %95 = vector.broadcast %94 : vector<5x1xf32> to vector<5x5xf32>
    %96 = arith.subf %92, %95 : vector<5x5xf32>
    %97 = math.exp %96 : vector<5x5xf32>
    %cst_46 = arith.constant dense<0.000000e+00> : vector<5xf32>
    %98 = vector.multi_reduction <add>, %97, %cst_46 [1] : vector<5x5xf32> to vector<5xf32>
    %99 = vector.shape_cast %98 : vector<5xf32> to vector<5x1xf32>
    %100 = vector.broadcast %99 : vector<5x1xf32> to vector<5x5xf32>
    %101 = arith.divf %97, %100 : vector<5x5xf32>
    %cst_47 = arith.constant dense<0.000000e+00> : vector<5x16xf32>
    %102 = tpu.matmul %101, %89, %cst_47 {dimension_numbers = #tpu.dot_dimension_numbers<[1], [0], [0], [1], [0, 0, 1, 1], [], []>} : vector<5x5xf32>, vector<5x16xf32>, vector<5x16xf32> -> vector<5x16xf32>
    %103 = vector.extract_strided_slice %65 {offsets = [16, 0], sizes = [16, 64], strides = [1, 1]} : vector<64x64xbf16> to vector<16x64xbf16>
    %104 = arith.truncf %102 : vector<5x16xf32> to vector<5x16xbf16>
    %cst_48 = arith.constant dense<0.000000e+00> : vector<5x64xf32>
    %105 = tpu.matmul %104, %103, %cst_48 {dimension_numbers = #tpu.dot_dimension_numbers<[1], [0], [0], [1], [0, 0, 1, 1], [], []>} : vector<5x16xbf16>, vector<16x64xbf16>, vector<5x64xf32> -> vector<5x64xf32>
    %106 = arith.addf %86, %105 : vector<5x64xf32>
    %107 = vector.extract_strided_slice %63 {offsets = [0, 32], sizes = [5, 16], strides = [1, 1]} : vector<5x192xf32> to vector<5x16xf32>
    %108 = vector.extract_strided_slice %63 {offsets = [0, 96], sizes = [5, 16], strides = [1, 1]} : vector<5x192xf32> to vector<5x16xf32>
    %109 = vector.extract_strided_slice %63 {offsets = [0, 160], sizes = [5, 16], strides = [1, 1]} : vector<5x192xf32> to vector<5x16xf32>
    %cst_49 = arith.constant dense<0.000000e+00> : vector<5x5xf32>
    %110 = tpu.matmul %107, %108, %cst_49 {dimension_numbers = #tpu.dot_dimension_numbers<[1], [1], [0], [0], [0, 0, 1, 0], [], []>} : vector<5x16xf32>, vector<5x16xf32>, vector<5x5xf32> -> vector<5x5xf32>
    %cst_50 = arith.constant 2.500000e-01 : f32
    %111 = vector.broadcast %cst_50 : f32 to vector<5x5xf32>
    %112 = arith.mulf %110, %111 : vector<5x5xf32>
    %cst_51 = arith.constant dense<0xFF800000> : vector<5xf32>
    %113 = vector.multi_reduction <maximumf>, %112, %cst_51 [1] : vector<5x5xf32> to vector<5xf32>
    %114 = vector.shape_cast %113 : vector<5xf32> to vector<5x1xf32>
    %115 = vector.broadcast %114 : vector<5x1xf32> to vector<5x5xf32>
    %116 = arith.subf %112, %115 : vector<5x5xf32>
    %117 = math.exp %116 : vector<5x5xf32>
    %cst_52 = arith.constant dense<0.000000e+00> : vector<5xf32>
    %118 = vector.multi_reduction <add>, %117, %cst_52 [1] : vector<5x5xf32> to vector<5xf32>
    %119 = vector.shape_cast %118 : vector<5xf32> to vector<5x1xf32>
    %120 = vector.broadcast %119 : vector<5x1xf32> to vector<5x5xf32>
    %121 = arith.divf %117, %120 : vector<5x5xf32>
    %cst_53 = arith.constant dense<0.000000e+00> : vector<5x16xf32>
    %122 = tpu.matmul %121, %109, %cst_53 {dimension_numbers = #tpu.dot_dimension_numbers<[1], [0], [0], [1], [0, 0, 1, 1], [], []>} : vector<5x5xf32>, vector<5x16xf32>, vector<5x16xf32> -> vector<5x16xf32>
    %123 = vector.extract_strided_slice %65 {offsets = [32, 0], sizes = [16, 64], strides = [1, 1]} : vector<64x64xbf16> to vector<16x64xbf16>
    %124 = arith.truncf %122 : vector<5x16xf32> to vector<5x16xbf16>
    %cst_54 = arith.constant dense<0.000000e+00> : vector<5x64xf32>
    %125 = tpu.matmul %124, %123, %cst_54 {dimension_numbers = #tpu.dot_dimension_numbers<[1], [0], [0], [1], [0, 0, 1, 1], [], []>} : vector<5x16xbf16>, vector<16x64xbf16>, vector<5x64xf32> -> vector<5x64xf32>
    %126 = arith.addf %106, %125 : vector<5x64xf32>
    %127 = vector.extract_strided_slice %63 {offsets = [0, 48], sizes = [5, 16], strides = [1, 1]} : vector<5x192xf32> to vector<5x16xf32>
    %128 = vector.extract_strided_slice %63 {offsets = [0, 112], sizes = [5, 16], strides = [1, 1]} : vector<5x192xf32> to vector<5x16xf32>
    %129 = vector.extract_strided_slice %63 {offsets = [0, 176], sizes = [5, 16], strides = [1, 1]} : vector<5x192xf32> to vector<5x16xf32>
    %cst_55 = arith.constant dense<0.000000e+00> : vector<5x5xf32>
    %130 = tpu.matmul %127, %128, %cst_55 {dimension_numbers = #tpu.dot_dimension_numbers<[1], [1], [0], [0], [0, 0, 1, 0], [], []>} : vector<5x16xf32>, vector<5x16xf32>, vector<5x5xf32> -> vector<5x5xf32>
    %cst_56 = arith.constant 2.500000e-01 : f32
    %131 = vector.broadcast %cst_56 : f32 to vector<5x5xf32>
    %132 = arith.mulf %130, %131 : vector<5x5xf32>
    %cst_57 = arith.constant dense<0xFF800000> : vector<5xf32>
    %133 = vector.multi_reduction <maximumf>, %132, %cst_57 [1] : vector<5x5xf32> to vector<5xf32>
    %134 = vector.shape_cast %133 : vector<5xf32> to vector<5x1xf32>
    %135 = vector.broadcast %134 : vector<5x1xf32> to vector<5x5xf32>
    %136 = arith.subf %132, %135 : vector<5x5xf32>
    %137 = math.exp %136 : vector<5x5xf32>
    %cst_58 = arith.constant dense<0.000000e+00> : vector<5xf32>
    %138 = vector.multi_reduction <add>, %137, %cst_58 [1] : vector<5x5xf32> to vector<5xf32>
    %139 = vector.shape_cast %138 : vector<5xf32> to vector<5x1xf32>
    %140 = vector.broadcast %139 : vector<5x1xf32> to vector<5x5xf32>
    %141 = arith.divf %137, %140 : vector<5x5xf32>
    %cst_59 = arith.constant dense<0.000000e+00> : vector<5x16xf32>
    %142 = tpu.matmul %141, %129, %cst_59 {dimension_numbers = #tpu.dot_dimension_numbers<[1], [0], [0], [1], [0, 0, 1, 1], [], []>} : vector<5x5xf32>, vector<5x16xf32>, vector<5x16xf32> -> vector<5x16xf32>
    %143 = vector.extract_strided_slice %65 {offsets = [48, 0], sizes = [16, 64], strides = [1, 1]} : vector<64x64xbf16> to vector<16x64xbf16>
    %144 = arith.truncf %142 : vector<5x16xf32> to vector<5x16xbf16>
    %cst_60 = arith.constant dense<0.000000e+00> : vector<5x64xf32>
    %145 = tpu.matmul %144, %143, %cst_60 {dimension_numbers = #tpu.dot_dimension_numbers<[1], [0], [0], [1], [0, 0, 1, 1], [], []>} : vector<5x16xbf16>, vector<16x64xbf16>, vector<5x64xf32> -> vector<5x64xf32>
    %146 = arith.addf %126, %145 : vector<5x64xf32>
    %147 = arith.addf %29, %146 : vector<5x64xf32>
    %c0_61 = arith.constant 0 : index
    %c0_62 = arith.constant 0 : index
    %c0_63 = arith.constant 0 : index
    %148 = vector.load %arg11[%c0_61, %c0_62, %c0_63] : memref<2x1x64xf32, #tpu.memory_space<vmem>>, vector<1x1x64xf32>
    %149 = vector.shape_cast %148 : vector<1x1x64xf32> to vector<1x64xf32>
    %150 = vector.broadcast %149 : vector<1x64xf32> to vector<5x64xf32>
    %151 = arith.addf %147, %150 : vector<5x64xf32>
    %c0_64 = arith.constant 0 : index
    %c0_65 = arith.constant 0 : index
    %c0_66 = arith.constant 0 : index
    %152 = vector.load %arg12[%c0_64, %c0_65, %c0_66] : memref<2x1x64xf32, #tpu.memory_space<vmem>>, vector<1x1x64xf32>
    %153 = vector.shape_cast %152 : vector<1x1x64xf32> to vector<1x64xf32>
    %c0_67 = arith.constant 0 : index
    %c0_68 = arith.constant 0 : index
    %c0_69 = arith.constant 0 : index
    %154 = vector.load %arg13[%c0_67, %c0_68, %c0_69] : memref<2x1x64xf32, #tpu.memory_space<vmem>>, vector<1x1x64xf32>
    %155 = vector.shape_cast %154 : vector<1x1x64xf32> to vector<1x64xf32>
    %cst_70 = arith.constant dense<0.000000e+00> : vector<5xf32>
    %156 = vector.multi_reduction <add>, %151, %cst_70 [1] : vector<5x64xf32> to vector<5xf32>
    %157 = vector.shape_cast %156 : vector<5xf32> to vector<5x1xf32>
    %cst_71 = arith.constant 6.400000e+01 : f32
    %158 = vector.broadcast %cst_71 : f32 to vector<5x1xf32>
    %159 = arith.divf %157, %158 : vector<5x1xf32>
    %160 = vector.broadcast %159 : vector<5x1xf32> to vector<5x64xf32>
    %161 = arith.subf %151, %160 : vector<5x64xf32>
    %162 = arith.mulf %161, %161 : vector<5x64xf32>
    %cst_72 = arith.constant dense<0.000000e+00> : vector<5xf32>
    %163 = vector.multi_reduction <add>, %162, %cst_72 [1] : vector<5x64xf32> to vector<5xf32>
    %164 = vector.shape_cast %163 : vector<5xf32> to vector<5x1xf32>
    %cst_73 = arith.constant 6.400000e+01 : f32
    %165 = vector.broadcast %cst_73 : f32 to vector<5x1xf32>
    %166 = arith.divf %164, %165 : vector<5x1xf32>
    %167 = vector.broadcast %159 : vector<5x1xf32> to vector<5x64xf32>
    %168 = arith.subf %151, %167 : vector<5x64xf32>
    %cst_74 = arith.constant 9.99999974E-6 : f32
    %169 = vector.broadcast %cst_74 : f32 to vector<5x1xf32>
    %170 = arith.addf %166, %169 : vector<5x1xf32>
    %171 = math.rsqrt %170 : vector<5x1xf32>
    %172 = vector.broadcast %171 : vector<5x1xf32> to vector<5x64xf32>
    %173 = arith.mulf %168, %172 : vector<5x64xf32>
    %174 = vector.broadcast %153 : vector<1x64xf32> to vector<5x64xf32>
    %175 = arith.mulf %173, %174 : vector<5x64xf32>
    %176 = vector.broadcast %155 : vector<1x64xf32> to vector<5x64xf32>
    %177 = arith.addf %175, %176 : vector<5x64xf32>
    %c0_75 = arith.constant 0 : index
    %c0_76 = arith.constant 0 : index
    %c0_77 = arith.constant 0 : index
    %178 = vector.load %arg14[%c0_75, %c0_76, %c0_77] : memref<2x64x256xbf16, #tpu.memory_space<vmem>>, vector<1x64x256xbf16>
    %179 = vector.shape_cast %178 : vector<1x64x256xbf16> to vector<64x256xbf16>
    %180 = arith.truncf %177 : vector<5x64xf32> to vector<5x64xbf16>
    %cst_78 = arith.constant dense<0.000000e+00> : vector<5x256xf32>
    %181 = tpu.matmul %180, %179, %cst_78 {dimension_numbers = #tpu.dot_dimension_numbers<[1], [0], [0], [1], [0, 0, 1, 1], [], []>} : vector<5x64xbf16>, vector<64x256xbf16>, vector<5x256xf32> -> vector<5x256xf32>
    %c0_79 = arith.constant 0 : index
    %c0_80 = arith.constant 0 : index
    %c0_81 = arith.constant 0 : index
    %182 = vector.load %arg15[%c0_79, %c0_80, %c0_81] : memref<2x1x256xf32, #tpu.memory_space<vmem>>, vector<1x1x256xf32>
    %183 = vector.shape_cast %182 : vector<1x1x256xf32> to vector<1x256xf32>
    %184 = vector.broadcast %183 : vector<1x256xf32> to vector<5x256xf32>
    %185 = arith.addf %181, %184 : vector<5x256xf32>
    %cst_82 = arith.constant 1.702000e+00 : f32
    %186 = vector.broadcast %cst_82 : f32 to vector<5x256xf32>
    %187 = arith.mulf %186, %185 : vector<5x256xf32>
    %188 = arith.negf %187 : vector<5x256xf32>
    %189 = math.exp %188 : vector<5x256xf32>
    %cst_83 = arith.constant 1.000000e+00 : f32
    %190 = vector.broadcast %cst_83 : f32 to vector<5x256xf32>
    %191 = arith.addf %190, %189 : vector<5x256xf32>
    %192 = arith.divf %190, %191 : vector<5x256xf32>
    %193 = arith.mulf %185, %192 : vector<5x256xf32>
    %c0_84 = arith.constant 0 : index
    %c0_85 = arith.constant 0 : index
    %c0_86 = arith.constant 0 : index
    %194 = vector.load %arg16[%c0_84, %c0_85, %c0_86] : memref<2x256x64xbf16, #tpu.memory_space<vmem>>, vector<1x256x64xbf16>
    %195 = vector.shape_cast %194 : vector<1x256x64xbf16> to vector<256x64xbf16>
    %196 = arith.truncf %193 : vector<5x256xf32> to vector<5x256xbf16>
    %cst_87 = arith.constant dense<0.000000e+00> : vector<5x64xf32>
    %197 = tpu.matmul %196, %195, %cst_87 {dimension_numbers = #tpu.dot_dimension_numbers<[1], [0], [0], [1], [0, 0, 1, 1], [], []>} : vector<5x256xbf16>, vector<256x64xbf16>, vector<5x64xf32> -> vector<5x64xf32>
    %198 = arith.addf %151, %197 : vector<5x64xf32>
    %c0_88 = arith.constant 0 : index
    %c0_89 = arith.constant 0 : index
    %c0_90 = arith.constant 0 : index
    %199 = vector.load %arg17[%c0_88, %c0_89, %c0_90] : memref<2x1x64xf32, #tpu.memory_space<vmem>>, vector<1x1x64xf32>
    %200 = vector.shape_cast %199 : vector<1x1x64xf32> to vector<1x64xf32>
    %201 = vector.broadcast %200 : vector<1x64xf32> to vector<5x64xf32>
    %202 = arith.addf %198, %201 : vector<5x64xf32>
    %c1 = arith.constant 1 : index
    %c0_91 = arith.constant 0 : index
    %c0_92 = arith.constant 0 : index
    %203 = vector.load %arg6[%c1, %c0_91, %c0_92] : memref<2x1x64xf32, #tpu.memory_space<vmem>>, vector<1x1x64xf32>
    %204 = vector.shape_cast %203 : vector<1x1x64xf32> to vector<1x64xf32>
    %c1_93 = arith.constant 1 : index
    %c0_94 = arith.constant 0 : index
    %c0_95 = arith.constant 0 : index
    %205 = vector.load %arg7[%c1_93, %c0_94, %c0_95] : memref<2x1x64xf32, #tpu.memory_space<vmem>>, vector<1x1x64xf32>
    %206 = vector.shape_cast %205 : vector<1x1x64xf32> to vector<1x64xf32>
    %cst_96 = arith.constant dense<0.000000e+00> : vector<5xf32>
    %207 = vector.multi_reduction <add>, %202, %cst_96 [1] : vector<5x64xf32> to vector<5xf32>
    %208 = vector.shape_cast %207 : vector<5xf32> to vector<5x1xf32>
    %cst_97 = arith.constant 6.400000e+01 : f32
    %209 = vector.broadcast %cst_97 : f32 to vector<5x1xf32>
    %210 = arith.divf %208, %209 : vector<5x1xf32>
    %211 = vector.broadcast %210 : vector<5x1xf32> to vector<5x64xf32>
    %212 = arith.subf %202, %211 : vector<5x64xf32>
    %213 = arith.mulf %212, %212 : vector<5x64xf32>
    %cst_98 = arith.constant dense<0.000000e+00> : vector<5xf32>
    %214 = vector.multi_reduction <add>, %213, %cst_98 [1] : vector<5x64xf32> to vector<5xf32>
    %215 = vector.shape_cast %214 : vector<5xf32> to vector<5x1xf32>
    %cst_99 = arith.constant 6.400000e+01 : f32
    %216 = vector.broadcast %cst_99 : f32 to vector<5x1xf32>
    %217 = arith.divf %215, %216 : vector<5x1xf32>
    %218 = vector.broadcast %210 : vector<5x1xf32> to vector<5x64xf32>
    %219 = arith.subf %202, %218 : vector<5x64xf32>
    %cst_100 = arith.constant 9.99999974E-6 : f32
    %220 = vector.broadcast %cst_100 : f32 to vector<5x1xf32>
    %221 = arith.addf %217, %220 : vector<5x1xf32>
    %222 = math.rsqrt %221 : vector<5x1xf32>
    %223 = vector.broadcast %222 : vector<5x1xf32> to vector<5x64xf32>
    %224 = arith.mulf %219, %223 : vector<5x64xf32>
    %225 = vector.broadcast %204 : vector<1x64xf32> to vector<5x64xf32>
    %226 = arith.mulf %224, %225 : vector<5x64xf32>
    %227 = vector.broadcast %206 : vector<1x64xf32> to vector<5x64xf32>
    %228 = arith.addf %226, %227 : vector<5x64xf32>
    %c1_101 = arith.constant 1 : index
    %c0_102 = arith.constant 0 : index
    %c0_103 = arith.constant 0 : index
    %229 = vector.load %arg8[%c1_101, %c0_102, %c0_103] : memref<2x64x192xbf16, #tpu.memory_space<vmem>>, vector<1x64x192xbf16>
    %230 = vector.shape_cast %229 : vector<1x64x192xbf16> to vector<64x192xbf16>
    %231 = arith.truncf %228 : vector<5x64xf32> to vector<5x64xbf16>
    %cst_104 = arith.constant dense<0.000000e+00> : vector<5x192xf32>
    %232 = tpu.matmul %231, %230, %cst_104 {dimension_numbers = #tpu.dot_dimension_numbers<[1], [0], [0], [1], [0, 0, 1, 1], [], []>} : vector<5x64xbf16>, vector<64x192xbf16>, vector<5x192xf32> -> vector<5x192xf32>
    %c1_105 = arith.constant 1 : index
    %c0_106 = arith.constant 0 : index
    %c0_107 = arith.constant 0 : index
    %233 = vector.load %arg9[%c1_105, %c0_106, %c0_107] : memref<2x1x192xf32, #tpu.memory_space<vmem>>, vector<1x1x192xf32>
    %234 = vector.shape_cast %233 : vector<1x1x192xf32> to vector<1x192xf32>
    %235 = vector.broadcast %234 : vector<1x192xf32> to vector<5x192xf32>
    %236 = arith.addf %232, %235 : vector<5x192xf32>
    %c1_108 = arith.constant 1 : index
    %c0_109 = arith.constant 0 : index
    %c0_110 = arith.constant 0 : index
    %237 = vector.load %arg10[%c1_108, %c0_109, %c0_110] : memref<2x64x64xbf16, #tpu.memory_space<vmem>>, vector<1x64x64xbf16>
    %238 = vector.shape_cast %237 : vector<1x64x64xbf16> to vector<64x64xbf16>
    %cst_111 = arith.constant 0.000000e+00 : f32
    %239 = vector.broadcast %cst_111 : f32 to vector<5x64xf32>
    %240 = vector.extract_strided_slice %236 {offsets = [0, 0], sizes = [5, 16], strides = [1, 1]} : vector<5x192xf32> to vector<5x16xf32>
    %241 = vector.extract_strided_slice %236 {offsets = [0, 64], sizes = [5, 16], strides = [1, 1]} : vector<5x192xf32> to vector<5x16xf32>
    %242 = vector.extract_strided_slice %236 {offsets = [0, 128], sizes = [5, 16], strides = [1, 1]} : vector<5x192xf32> to vector<5x16xf32>
    %cst_112 = arith.constant dense<0.000000e+00> : vector<5x5xf32>
    %243 = tpu.matmul %240, %241, %cst_112 {dimension_numbers = #tpu.dot_dimension_numbers<[1], [1], [0], [0], [0, 0, 1, 0], [], []>} : vector<5x16xf32>, vector<5x16xf32>, vector<5x5xf32> -> vector<5x5xf32>
    %cst_113 = arith.constant 2.500000e-01 : f32
    %244 = vector.broadcast %cst_113 : f32 to vector<5x5xf32>
    %245 = arith.mulf %243, %244 : vector<5x5xf32>
    %cst_114 = arith.constant dense<0xFF800000> : vector<5xf32>
    %246 = vector.multi_reduction <maximumf>, %245, %cst_114 [1] : vector<5x5xf32> to vector<5xf32>
    %247 = vector.shape_cast %246 : vector<5xf32> to vector<5x1xf32>
    %248 = vector.broadcast %247 : vector<5x1xf32> to vector<5x5xf32>
    %249 = arith.subf %245, %248 : vector<5x5xf32>
    %250 = math.exp %249 : vector<5x5xf32>
    %cst_115 = arith.constant dense<0.000000e+00> : vector<5xf32>
    %251 = vector.multi_reduction <add>, %250, %cst_115 [1] : vector<5x5xf32> to vector<5xf32>
    %252 = vector.shape_cast %251 : vector<5xf32> to vector<5x1xf32>
    %253 = vector.broadcast %252 : vector<5x1xf32> to vector<5x5xf32>
    %254 = arith.divf %250, %253 : vector<5x5xf32>
    %cst_116 = arith.constant dense<0.000000e+00> : vector<5x16xf32>
    %255 = tpu.matmul %254, %242, %cst_116 {dimension_numbers = #tpu.dot_dimension_numbers<[1], [0], [0], [1], [0, 0, 1, 1], [], []>} : vector<5x5xf32>, vector<5x16xf32>, vector<5x16xf32> -> vector<5x16xf32>
    %256 = vector.extract_strided_slice %238 {offsets = [0, 0], sizes = [16, 64], strides = [1, 1]} : vector<64x64xbf16> to vector<16x64xbf16>
    %257 = arith.truncf %255 : vector<5x16xf32> to vector<5x16xbf16>
    %cst_117 = arith.constant dense<0.000000e+00> : vector<5x64xf32>
    %258 = tpu.matmul %257, %256, %cst_117 {dimension_numbers = #tpu.dot_dimension_numbers<[1], [0], [0], [1], [0, 0, 1, 1], [], []>} : vector<5x16xbf16>, vector<16x64xbf16>, vector<5x64xf32> -> vector<5x64xf32>
    %259 = arith.addf %239, %258 : vector<5x64xf32>
    %260 = vector.extract_strided_slice %236 {offsets = [0, 16], sizes = [5, 16], strides = [1, 1]} : vector<5x192xf32> to vector<5x16xf32>
    %261 = vector.extract_strided_slice %236 {offsets = [0, 80], sizes = [5, 16], strides = [1, 1]} : vector<5x192xf32> to vector<5x16xf32>
    %262 = vector.extract_strided_slice %236 {offsets = [0, 144], sizes = [5, 16], strides = [1, 1]} : vector<5x192xf32> to vector<5x16xf32>
    %cst_118 = arith.constant dense<0.000000e+00> : vector<5x5xf32>
    %263 = tpu.matmul %260, %261, %cst_118 {dimension_numbers = #tpu.dot_dimension_numbers<[1], [1], [0], [0], [0, 0, 1, 0], [], []>} : vector<5x16xf32>, vector<5x16xf32>, vector<5x5xf32> -> vector<5x5xf32>
    %cst_119 = arith.constant 2.500000e-01 : f32
    %264 = vector.broadcast %cst_119 : f32 to vector<5x5xf32>
    %265 = arith.mulf %263, %264 : vector<5x5xf32>
    %cst_120 = arith.constant dense<0xFF800000> : vector<5xf32>
    %266 = vector.multi_reduction <maximumf>, %265, %cst_120 [1] : vector<5x5xf32> to vector<5xf32>
    %267 = vector.shape_cast %266 : vector<5xf32> to vector<5x1xf32>
    %268 = vector.broadcast %267 : vector<5x1xf32> to vector<5x5xf32>
    %269 = arith.subf %265, %268 : vector<5x5xf32>
    %270 = math.exp %269 : vector<5x5xf32>
    %cst_121 = arith.constant dense<0.000000e+00> : vector<5xf32>
    %271 = vector.multi_reduction <add>, %270, %cst_121 [1] : vector<5x5xf32> to vector<5xf32>
    %272 = vector.shape_cast %271 : vector<5xf32> to vector<5x1xf32>
    %273 = vector.broadcast %272 : vector<5x1xf32> to vector<5x5xf32>
    %274 = arith.divf %270, %273 : vector<5x5xf32>
    %cst_122 = arith.constant dense<0.000000e+00> : vector<5x16xf32>
    %275 = tpu.matmul %274, %262, %cst_122 {dimension_numbers = #tpu.dot_dimension_numbers<[1], [0], [0], [1], [0, 0, 1, 1], [], []>} : vector<5x5xf32>, vector<5x16xf32>, vector<5x16xf32> -> vector<5x16xf32>
    %276 = vector.extract_strided_slice %238 {offsets = [16, 0], sizes = [16, 64], strides = [1, 1]} : vector<64x64xbf16> to vector<16x64xbf16>
    %277 = arith.truncf %275 : vector<5x16xf32> to vector<5x16xbf16>
    %cst_123 = arith.constant dense<0.000000e+00> : vector<5x64xf32>
    %278 = tpu.matmul %277, %276, %cst_123 {dimension_numbers = #tpu.dot_dimension_numbers<[1], [0], [0], [1], [0, 0, 1, 1], [], []>} : vector<5x16xbf16>, vector<16x64xbf16>, vector<5x64xf32> -> vector<5x64xf32>
    %279 = arith.addf %259, %278 : vector<5x64xf32>
    %280 = vector.extract_strided_slice %236 {offsets = [0, 32], sizes = [5, 16], strides = [1, 1]} : vector<5x192xf32> to vector<5x16xf32>
    %281 = vector.extract_strided_slice %236 {offsets = [0, 96], sizes = [5, 16], strides = [1, 1]} : vector<5x192xf32> to vector<5x16xf32>
    %282 = vector.extract_strided_slice %236 {offsets = [0, 160], sizes = [5, 16], strides = [1, 1]} : vector<5x192xf32> to vector<5x16xf32>
    %cst_124 = arith.constant dense<0.000000e+00> : vector<5x5xf32>
    %283 = tpu.matmul %280, %281, %cst_124 {dimension_numbers = #tpu.dot_dimension_numbers<[1], [1], [0], [0], [0, 0, 1, 0], [], []>} : vector<5x16xf32>, vector<5x16xf32>, vector<5x5xf32> -> vector<5x5xf32>
    %cst_125 = arith.constant 2.500000e-01 : f32
    %284 = vector.broadcast %cst_125 : f32 to vector<5x5xf32>
    %285 = arith.mulf %283, %284 : vector<5x5xf32>
    %cst_126 = arith.constant dense<0xFF800000> : vector<5xf32>
    %286 = vector.multi_reduction <maximumf>, %285, %cst_126 [1] : vector<5x5xf32> to vector<5xf32>
    %287 = vector.shape_cast %286 : vector<5xf32> to vector<5x1xf32>
    %288 = vector.broadcast %287 : vector<5x1xf32> to vector<5x5xf32>
    %289 = arith.subf %285, %288 : vector<5x5xf32>
    %290 = math.exp %289 : vector<5x5xf32>
    %cst_127 = arith.constant dense<0.000000e+00> : vector<5xf32>
    %291 = vector.multi_reduction <add>, %290, %cst_127 [1] : vector<5x5xf32> to vector<5xf32>
    %292 = vector.shape_cast %291 : vector<5xf32> to vector<5x1xf32>
    %293 = vector.broadcast %292 : vector<5x1xf32> to vector<5x5xf32>
    %294 = arith.divf %290, %293 : vector<5x5xf32>
    %cst_128 = arith.constant dense<0.000000e+00> : vector<5x16xf32>
    %295 = tpu.matmul %294, %282, %cst_128 {dimension_numbers = #tpu.dot_dimension_numbers<[1], [0], [0], [1], [0, 0, 1, 1], [], []>} : vector<5x5xf32>, vector<5x16xf32>, vector<5x16xf32> -> vector<5x16xf32>
    %296 = vector.extract_strided_slice %238 {offsets = [32, 0], sizes = [16, 64], strides = [1, 1]} : vector<64x64xbf16> to vector<16x64xbf16>
    %297 = arith.truncf %295 : vector<5x16xf32> to vector<5x16xbf16>
    %cst_129 = arith.constant dense<0.000000e+00> : vector<5x64xf32>
    %298 = tpu.matmul %297, %296, %cst_129 {dimension_numbers = #tpu.dot_dimension_numbers<[1], [0], [0], [1], [0, 0, 1, 1], [], []>} : vector<5x16xbf16>, vector<16x64xbf16>, vector<5x64xf32> -> vector<5x64xf32>
    %299 = arith.addf %279, %298 : vector<5x64xf32>
    %300 = vector.extract_strided_slice %236 {offsets = [0, 48], sizes = [5, 16], strides = [1, 1]} : vector<5x192xf32> to vector<5x16xf32>
    %301 = vector.extract_strided_slice %236 {offsets = [0, 112], sizes = [5, 16], strides = [1, 1]} : vector<5x192xf32> to vector<5x16xf32>
    %302 = vector.extract_strided_slice %236 {offsets = [0, 176], sizes = [5, 16], strides = [1, 1]} : vector<5x192xf32> to vector<5x16xf32>
    %cst_130 = arith.constant dense<0.000000e+00> : vector<5x5xf32>
    %303 = tpu.matmul %300, %301, %cst_130 {dimension_numbers = #tpu.dot_dimension_numbers<[1], [1], [0], [0], [0, 0, 1, 0], [], []>} : vector<5x16xf32>, vector<5x16xf32>, vector<5x5xf32> -> vector<5x5xf32>
    %cst_131 = arith.constant 2.500000e-01 : f32
    %304 = vector.broadcast %cst_131 : f32 to vector<5x5xf32>
    %305 = arith.mulf %303, %304 : vector<5x5xf32>
    %cst_132 = arith.constant dense<0xFF800000> : vector<5xf32>
    %306 = vector.multi_reduction <maximumf>, %305, %cst_132 [1] : vector<5x5xf32> to vector<5xf32>
    %307 = vector.shape_cast %306 : vector<5xf32> to vector<5x1xf32>
    %308 = vector.broadcast %307 : vector<5x1xf32> to vector<5x5xf32>
    %309 = arith.subf %305, %308 : vector<5x5xf32>
    %310 = math.exp %309 : vector<5x5xf32>
    %cst_133 = arith.constant dense<0.000000e+00> : vector<5xf32>
    %311 = vector.multi_reduction <add>, %310, %cst_133 [1] : vector<5x5xf32> to vector<5xf32>
    %312 = vector.shape_cast %311 : vector<5xf32> to vector<5x1xf32>
    %313 = vector.broadcast %312 : vector<5x1xf32> to vector<5x5xf32>
    %314 = arith.divf %310, %313 : vector<5x5xf32>
    %cst_134 = arith.constant dense<0.000000e+00> : vector<5x16xf32>
    %315 = tpu.matmul %314, %302, %cst_134 {dimension_numbers = #tpu.dot_dimension_numbers<[1], [0], [0], [1], [0, 0, 1, 1], [], []>} : vector<5x5xf32>, vector<5x16xf32>, vector<5x16xf32> -> vector<5x16xf32>
    %316 = vector.extract_strided_slice %238 {offsets = [48, 0], sizes = [16, 64], strides = [1, 1]} : vector<64x64xbf16> to vector<16x64xbf16>
    %317 = arith.truncf %315 : vector<5x16xf32> to vector<5x16xbf16>
    %cst_135 = arith.constant dense<0.000000e+00> : vector<5x64xf32>
    %318 = tpu.matmul %317, %316, %cst_135 {dimension_numbers = #tpu.dot_dimension_numbers<[1], [0], [0], [1], [0, 0, 1, 1], [], []>} : vector<5x16xbf16>, vector<16x64xbf16>, vector<5x64xf32> -> vector<5x64xf32>
    %319 = arith.addf %299, %318 : vector<5x64xf32>
    %320 = arith.addf %202, %319 : vector<5x64xf32>
    %c1_136 = arith.constant 1 : index
    %c0_137 = arith.constant 0 : index
    %c0_138 = arith.constant 0 : index
    %321 = vector.load %arg11[%c1_136, %c0_137, %c0_138] : memref<2x1x64xf32, #tpu.memory_space<vmem>>, vector<1x1x64xf32>
    %322 = vector.shape_cast %321 : vector<1x1x64xf32> to vector<1x64xf32>
    %323 = vector.broadcast %322 : vector<1x64xf32> to vector<5x64xf32>
    %324 = arith.addf %320, %323 : vector<5x64xf32>
    %c1_139 = arith.constant 1 : index
    %c0_140 = arith.constant 0 : index
    %c0_141 = arith.constant 0 : index
    %325 = vector.load %arg12[%c1_139, %c0_140, %c0_141] : memref<2x1x64xf32, #tpu.memory_space<vmem>>, vector<1x1x64xf32>
    %326 = vector.shape_cast %325 : vector<1x1x64xf32> to vector<1x64xf32>
    %c1_142 = arith.constant 1 : index
    %c0_143 = arith.constant 0 : index
    %c0_144 = arith.constant 0 : index
    %327 = vector.load %arg13[%c1_142, %c0_143, %c0_144] : memref<2x1x64xf32, #tpu.memory_space<vmem>>, vector<1x1x64xf32>
    %328 = vector.shape_cast %327 : vector<1x1x64xf32> to vector<1x64xf32>
    %cst_145 = arith.constant dense<0.000000e+00> : vector<5xf32>
    %329 = vector.multi_reduction <add>, %324, %cst_145 [1] : vector<5x64xf32> to vector<5xf32>
    %330 = vector.shape_cast %329 : vector<5xf32> to vector<5x1xf32>
    %cst_146 = arith.constant 6.400000e+01 : f32
    %331 = vector.broadcast %cst_146 : f32 to vector<5x1xf32>
    %332 = arith.divf %330, %331 : vector<5x1xf32>
    %333 = vector.broadcast %332 : vector<5x1xf32> to vector<5x64xf32>
    %334 = arith.subf %324, %333 : vector<5x64xf32>
    %335 = arith.mulf %334, %334 : vector<5x64xf32>
    %cst_147 = arith.constant dense<0.000000e+00> : vector<5xf32>
    %336 = vector.multi_reduction <add>, %335, %cst_147 [1] : vector<5x64xf32> to vector<5xf32>
    %337 = vector.shape_cast %336 : vector<5xf32> to vector<5x1xf32>
    %cst_148 = arith.constant 6.400000e+01 : f32
    %338 = vector.broadcast %cst_148 : f32 to vector<5x1xf32>
    %339 = arith.divf %337, %338 : vector<5x1xf32>
    %340 = vector.broadcast %332 : vector<5x1xf32> to vector<5x64xf32>
    %341 = arith.subf %324, %340 : vector<5x64xf32>
    %cst_149 = arith.constant 9.99999974E-6 : f32
    %342 = vector.broadcast %cst_149 : f32 to vector<5x1xf32>
    %343 = arith.addf %339, %342 : vector<5x1xf32>
    %344 = math.rsqrt %343 : vector<5x1xf32>
    %345 = vector.broadcast %344 : vector<5x1xf32> to vector<5x64xf32>
    %346 = arith.mulf %341, %345 : vector<5x64xf32>
    %347 = vector.broadcast %326 : vector<1x64xf32> to vector<5x64xf32>
    %348 = arith.mulf %346, %347 : vector<5x64xf32>
    %349 = vector.broadcast %328 : vector<1x64xf32> to vector<5x64xf32>
    %350 = arith.addf %348, %349 : vector<5x64xf32>
    %c1_150 = arith.constant 1 : index
    %c0_151 = arith.constant 0 : index
    %c0_152 = arith.constant 0 : index
    %351 = vector.load %arg14[%c1_150, %c0_151, %c0_152] : memref<2x64x256xbf16, #tpu.memory_space<vmem>>, vector<1x64x256xbf16>
    %352 = vector.shape_cast %351 : vector<1x64x256xbf16> to vector<64x256xbf16>
    %353 = arith.truncf %350 : vector<5x64xf32> to vector<5x64xbf16>
    %cst_153 = arith.constant dense<0.000000e+00> : vector<5x256xf32>
    %354 = tpu.matmul %353, %352, %cst_153 {dimension_numbers = #tpu.dot_dimension_numbers<[1], [0], [0], [1], [0, 0, 1, 1], [], []>} : vector<5x64xbf16>, vector<64x256xbf16>, vector<5x256xf32> -> vector<5x256xf32>
    %c1_154 = arith.constant 1 : index
    %c0_155 = arith.constant 0 : index
    %c0_156 = arith.constant 0 : index
    %355 = vector.load %arg15[%c1_154, %c0_155, %c0_156] : memref<2x1x256xf32, #tpu.memory_space<vmem>>, vector<1x1x256xf32>
    %356 = vector.shape_cast %355 : vector<1x1x256xf32> to vector<1x256xf32>
    %357 = vector.broadcast %356 : vector<1x256xf32> to vector<5x256xf32>
    %358 = arith.addf %354, %357 : vector<5x256xf32>
    %cst_157 = arith.constant 1.702000e+00 : f32
    %359 = vector.broadcast %cst_157 : f32 to vector<5x256xf32>
    %360 = arith.mulf %359, %358 : vector<5x256xf32>
    %361 = arith.negf %360 : vector<5x256xf32>
    %362 = math.exp %361 : vector<5x256xf32>
    %cst_158 = arith.constant 1.000000e+00 : f32
    %363 = vector.broadcast %cst_158 : f32 to vector<5x256xf32>
    %364 = arith.addf %363, %362 : vector<5x256xf32>
    %365 = arith.divf %363, %364 : vector<5x256xf32>
    %366 = arith.mulf %358, %365 : vector<5x256xf32>
    %c1_159 = arith.constant 1 : index
    %c0_160 = arith.constant 0 : index
    %c0_161 = arith.constant 0 : index
    %367 = vector.load %arg16[%c1_159, %c0_160, %c0_161] : memref<2x256x64xbf16, #tpu.memory_space<vmem>>, vector<1x256x64xbf16>
    %368 = vector.shape_cast %367 : vector<1x256x64xbf16> to vector<256x64xbf16>
    %369 = arith.truncf %366 : vector<5x256xf32> to vector<5x256xbf16>
    %cst_162 = arith.constant dense<0.000000e+00> : vector<5x64xf32>
    %370 = tpu.matmul %369, %368, %cst_162 {dimension_numbers = #tpu.dot_dimension_numbers<[1], [0], [0], [1], [0, 0, 1, 1], [], []>} : vector<5x256xbf16>, vector<256x64xbf16>, vector<5x64xf32> -> vector<5x64xf32>
    %371 = arith.addf %324, %370 : vector<5x64xf32>
    %c1_163 = arith.constant 1 : index
    %c0_164 = arith.constant 0 : index
    %c0_165 = arith.constant 0 : index
    %372 = vector.load %arg17[%c1_163, %c0_164, %c0_165] : memref<2x1x64xf32, #tpu.memory_space<vmem>>, vector<1x1x64xf32>
    %373 = vector.shape_cast %372 : vector<1x1x64xf32> to vector<1x64xf32>
    %374 = vector.broadcast %373 : vector<1x64xf32> to vector<5x64xf32>
    %375 = arith.addf %371, %374 : vector<5x64xf32>
    %376 = vector.extract_strided_slice %375 {offsets = [0, 0], sizes = [1, 64], strides = [1, 1]} : vector<5x64xf32> to vector<1x64xf32>
    %c0_166 = arith.constant 0 : index
    %c0_167 = arith.constant 0 : index
    %377 = vector.load %arg18[%c0_166, %c0_167] : memref<1x64xf32, #tpu.memory_space<vmem>>, vector<1x64xf32>
    %c0_168 = arith.constant 0 : index
    %c0_169 = arith.constant 0 : index
    %378 = vector.load %arg19[%c0_168, %c0_169] : memref<1x64xf32, #tpu.memory_space<vmem>>, vector<1x64xf32>
    %cst_170 = arith.constant dense<0.000000e+00> : vector<1xf32>
    %379 = vector.multi_reduction <add>, %376, %cst_170 [1] : vector<1x64xf32> to vector<1xf32>
    %380 = vector.shape_cast %379 : vector<1xf32> to vector<1x1xf32>
    %cst_171 = arith.constant 6.400000e+01 : f32
    %381 = vector.broadcast %cst_171 : f32 to vector<1x1xf32>
    %382 = arith.divf %380, %381 : vector<1x1xf32>
    %383 = vector.broadcast %382 : vector<1x1xf32> to vector<1x64xf32>
    %384 = arith.subf %376, %383 : vector<1x64xf32>
    %385 = arith.mulf %384, %384 : vector<1x64xf32>
    %cst_172 = arith.constant dense<0.000000e+00> : vector<1xf32>
    %386 = vector.multi_reduction <add>, %385, %cst_172 [1] : vector<1x64xf32> to vector<1xf32>
    %387 = vector.shape_cast %386 : vector<1xf32> to vector<1x1xf32>
    %cst_173 = arith.constant 6.400000e+01 : f32
    %388 = vector.broadcast %cst_173 : f32 to vector<1x1xf32>
    %389 = arith.divf %387, %388 : vector<1x1xf32>
    %390 = vector.broadcast %382 : vector<1x1xf32> to vector<1x64xf32>
    %391 = arith.subf %376, %390 : vector<1x64xf32>
    %cst_174 = arith.constant 9.99999974E-6 : f32
    %392 = vector.broadcast %cst_174 : f32 to vector<1x1xf32>
    %393 = arith.addf %389, %392 : vector<1x1xf32>
    %394 = math.rsqrt %393 : vector<1x1xf32>
    %395 = vector.broadcast %394 : vector<1x1xf32> to vector<1x64xf32>
    %396 = arith.mulf %391, %395 : vector<1x64xf32>
    %397 = arith.mulf %396, %377 : vector<1x64xf32>
    %398 = arith.addf %397, %378 : vector<1x64xf32>
    %399 = arith.truncf %398 : vector<1x64xf32> to vector<1x64xbf16>
    %c0_175 = arith.constant 0 : index
    %c0_176 = arith.constant 0 : index
    %400 = vector.load %arg20[%c0_175, %c0_176] : memref<64x32xbf16, #tpu.memory_space<vmem>>, vector<64x32xbf16>
    %cst_177 = arith.constant dense<0.000000e+00> : vector<1x32xf32>
    %401 = tpu.matmul %399, %400, %cst_177 {dimension_numbers = #tpu.dot_dimension_numbers<[1], [0], [0], [1], [0, 0, 1, 1], [], []>} : vector<1x64xbf16>, vector<64x32xbf16>, vector<1x32xf32> -> vector<1x32xf32>
    %c0_178 = arith.constant 0 : index
    %c0_179 = arith.constant 0 : index
    %c0_180 = arith.constant 0 : index
    %402 = vector.load %arg21[%c0_178, %c0_179, %c0_180] : memref<1x1x32xf32, #tpu.memory_space<vmem>>, vector<1x1x32xf32>
    %403 = vector.shape_cast %402 : vector<1x1x32xf32> to vector<1x32xf32>
    %404 = vector.shape_cast %401 : vector<1x32xf32> to vector<1x1x32xf32>
    tpu.vector_store %arg21[%c0_178, %c0_179, %c0_180], %404 {strides = array<i32>} : memref<1x1x32xf32, #tpu.memory_space<vmem>>, vector<1x1x32xf32>,
    return
  }
  func.func @transform_0(%arg0: i32) -> (i32, i32, i32) {
    %c0_i32 = arith.constant 0 : i32
    %c0_i32_0 = arith.constant 0 : i32
    %c0_i32_1 = arith.constant 0 : i32
    return %arg0, %c0_i32, %c0_i32_0 : i32, i32, i32
  }
  func.func @transform_1(%arg0: i32) -> (i32, i32) {
    %c0_i32 = arith.constant 0 : i32
    %c0_i32_0 = arith.constant 0 : i32
    %c0_i32_1 = arith.constant 0 : i32
    return %c0_i32, %c0_i32_0 : i32, i32
  }
  func.func @transform_2(%arg0: i32) -> (i32, i32) {
    %c0_i32 = arith.constant 0 : i32
    %c0_i32_0 = arith.constant 0 : i32
    %c0_i32_1 = arith.constant 0 : i32
    return %c0_i32, %c0_i32_0 : i32, i32
  }
  func.func @transform_3(%arg0: i32) -> (i32, i32) {
    %c0_i32 = arith.constant 0 : i32
    %c0_i32_0 = arith.constant 0 : i32
    %c0_i32_1 = arith.constant 0 : i32
    return %c0_i32, %c0_i32_0 : i32, i32
  }
  func.func @transform_4(%arg0: i32) -> (i32, i32) {
    %c0_i32 = arith.constant 0 : i32
    %c0_i32_0 = arith.constant 0 : i32
    %c0_i32_1 = arith.constant 0 : i32
    return %c0_i32, %c0_i32_0 : i32, i32
  }
  func.func @transform_5(%arg0: i32) -> (i32, i32, i32) {
    %c0_i32 = arith.constant 0 : i32
    %c0_i32_0 = arith.constant 0 : i32
    %c0_i32_1 = arith.constant 0 : i32
    %c0_i32_2 = arith.constant 0 : i32
    return %c0_i32, %c0_i32_0, %c0_i32_1 : i32, i32, i32
  }
  func.func @transform_6(%arg0: i32) -> (i32, i32, i32) {
    %c0_i32 = arith.constant 0 : i32
    %c0_i32_0 = arith.constant 0 : i32
    %c0_i32_1 = arith.constant 0 : i32
    %c0_i32_2 = arith.constant 0 : i32
    return %c0_i32, %c0_i32_0, %c0_i32_1 : i32, i32, i32
  }
  func.func @transform_7(%arg0: i32) -> (i32, i32, i32) {
    %c0_i32 = arith.constant 0 : i32
    %c0_i32_0 = arith.constant 0 : i32
    %c0_i32_1 = arith.constant 0 : i32
    %c0_i32_2 = arith.constant 0 : i32
    return %c0_i32, %c0_i32_0, %c0_i32_1 : i32, i32, i32
  }
  func.func @transform_8(%arg0: i32) -> (i32, i32, i32) {
    %c0_i32 = arith.constant 0 : i32
    %c0_i32_0 = arith.constant 0 : i32
    %c0_i32_1 = arith.constant 0 : i32
    %c0_i32_2 = arith.constant 0 : i32
    return %c0_i32, %c0_i32_0, %c0_i32_1 : i32, i32, i32
  }
  func.func @transform_9(%arg0: i32) -> (i32, i32, i32) {
    %c0_i32 = arith.constant 0 : i32
    %c0_i32_0 = arith.constant 0 : i32
    %c0_i32_1 = arith.constant 0 : i32
    %c0_i32_2 = arith.constant 0 : i32
    return %c0_i32, %c0_i32_0, %c0_i32_1 : i32, i32, i32
  }
  func.func @transform_10(%arg0: i32) -> (i32, i32, i32) {
    %c0_i32 = arith.constant 0 : i32
    %c0_i32_0 = arith.constant 0 : i32
    %c0_i32_1 = arith.constant 0 : i32
    %c0_i32_2 = arith.constant 0 : i32
    return %c0_i32, %c0_i32_0, %c0_i32_1 : i32, i32, i32
  }
  func.func @transform_11(%arg0: i32) -> (i32, i32, i32) {
    %c0_i32 = arith.constant 0 : i32
    %c0_i32_0 = arith.constant 0 : i32
    %c0_i32_1 = arith.constant 0 : i32
    %c0_i32_2 = arith.constant 0 : i32
    return %c0_i32, %c0_i32_0, %c0_i32_1 : i32, i32, i32
  }
  func.func @transform_12(%arg0: i32) -> (i32, i32, i32) {
    %c0_i32 = arith.constant 0 : i32
    %c0_i32_0 = arith.constant 0 : i32
    %c0_i32_1 = arith.constant 0 : i32
    %c0_i32_2 = arith.constant 0 : i32
    return %c0_i32, %c0_i32_0, %c0_i32_1 : i32, i32, i32
  }
  func.func @transform_13(%arg0: i32) -> (i32, i32, i32) {
    %c0_i32 = arith.constant 0 : i32
    %c0_i32_0 = arith.constant 0 : i32
    %c0_i32_1 = arith.constant 0 : i32
    %c0_i32_2 = arith.constant 0 : i32
    return %c0_i32, %c0_i32_0, %c0_i32_1 : i32, i32, i32
  }
  func.func @transform_14(%arg0: i32) -> (i32, i32, i32) {
    %c0_i32 = arith.constant 0 : i32
    %c0_i32_0 = arith.constant 0 : i32
    %c0_i32_1 = arith.constant 0 : i32
    %c0_i32_2 = arith.constant 0 : i32
    return %c0_i32, %c0_i32_0, %c0_i32_1 : i32, i32, i32
  }
  func.func @transform_15(%arg0: i32) -> (i32, i32, i32) {
    %c0_i32 = arith.constant 0 : i32
    %c0_i32_0 = arith.constant 0 : i32
    %c0_i32_1 = arith.constant 0 : i32
    %c0_i32_2 = arith.constant 0 : i32
    return %c0_i32, %c0_i32_0, %c0_i32_1 : i32, i32, i32
  }
  func.func @transform_16(%arg0: i32) -> (i32, i32, i32) {
    %c0_i32 = arith.constant 0 : i32
    %c0_i32_0 = arith.constant 0 : i32
    %c0_i32_1 = arith.constant 0 : i32
    %c0_i32_2 = arith.constant 0 : i32
    return %c0_i32, %c0_i32_0, %c0_i32_1 : i32, i32, i32
  }
  func.func @transform_17(%arg0: i32) -> (i32, i32) {
    %c0_i32 = arith.constant 0 : i32
    %c0_i32_0 = arith.constant 0 : i32
    %c0_i32_1 = arith.constant 0 : i32
    return %c0_i32, %c0_i32_0 : i32, i32
  }
  func.func @transform_18(%arg0: i32) -> (i32, i32) {
    %c0_i32 = arith.constant 0 : i32
    %c0_i32_0 = arith.constant 0 : i32
    %c0_i32_1 = arith.constant 0 : i32
    return %c0_i32, %c0_i32_0 : i32, i32
  }
  func.func @transform_19(%arg0: i32) -> (i32, i32) {
    %c0_i32 = arith.constant 0 : i32
    %c0_i32_0 = arith.constant 0 : i32
    %c0_i32_1 = arith.constant 0 : i32
    return %c0_i32, %c0_i32_0 : i32, i32
  }
  func.func @transform_20(%arg0: i32) -> (i32, i32, i32) {
    %c0_i32 = arith.constant 0 : i32
    %c0_i32_0 = arith.constant 0 : i32
    %c0_i32_1 = arith.constant 0 : i32
    return %arg0, %c0_i32, %c0_i32_0 : i32, i32, i32
  }
}

</mosaic_0001>

<bundles_post_ra>
// kernel: clip_module_forward.1
= control target key start
LH: loop header
LB: loop body
LE: loop exit
PB: predicated region body
PF: predicated region fallthrough
CT: control target
= control target key end

     0   :  { %s5846_s0 = inlined_call_operand.vmem [shape: bf16[2,5,768], index: 0, kind: input, shape index: {}]   ;;  %s5847_s1 = inlined_call_operand.vmem [shape: bf16[768,64], index: 1, kind: input, shape index: {}]   ;;  %s5848_s2 = inlined_call_operand.vmem [shape: f32[5,64], index: 2, kind: input, shape index: {}]   ;;  %s5849_s3 = inlined_call_operand.vmem [shape: f32[1,64], index: 3, kind: input, shape index: {}]   ;;  %s5850_s4 = inlined_call_operand.vmem [shape: f32[1,64], index: 4, kind: input, shape index: {}]   ;;  %s5851_s5 = inlined_call_operand.vmem [shape: f32[2,1,64], index: 5, kind: input, shape index: {}]   ;;  %s5852_s6 = inlined_call_operand.vmem [shape: f32[2,1,64], index: 6, kind: input, shape index: {}]   ;;  %s5853_s7 = inlined_call_operand.vmem [shape: bf16[2,64,192], index: 7, kind: input, shape index: {}]   ;;  %s5854_s8 = inlined_call_operand.vmem [shape: f32[2,1,192], index: 8, kind: input, shape index: {}]   ;;  %s5855_s9 = inlined_call_operand.vmem [shape: bf16[2,64,64], index: 9, kind: input, shape index: {}]   ;;  %s5856_s10 = inlined_call_operand.vmem [shape: f32[2,1,64], index: 10, kind: input, shape index: {}]   ;;  %s5857_s11 = inlined_call_operand.vmem [shape: f32[2,1,64], index: 11, kind: input, shape index: {}]   ;;  %s5858_s12 = inlined_call_operand.vmem [shape: f32[2,1,64], index: 12, kind: input, shape index: {}]   ;;  %s5859_s13 = inlined_call_operand.vmem [shape: bf16[2,64,256], index: 13, kind: input, shape index: {}]   ;;  %s5860_s14 = inlined_call_operand.vmem [shape: f32[2,1,256], index: 14, kind: input, shape index: {}]   ;;  %s5861_s15 = inlined_call_operand.vmem [shape: bf16[2,256,64], index: 15, kind: input, shape index: {}]   ;;  %s5862_s16 = inlined_call_operand.vmem [shape: f32[2,1,64], index: 16, kind: input, shape index: {}]   ;;  %s5863_s17 = inlined_call_operand.vmem [shape: f32[1,64], index: 17, kind: input, shape index: {}]   ;;  %s5864_s18 = inlined_call_operand.vmem [shape: f32[1,64], index: 18, kind: input, shape index: {}]   ;;  %s5865_s19 = inlined_call_operand.vmem [shape: bf16[64,32], index: 19, kind: input, shape index: {}]   ;;  %s5866_s20 = inlined_call_operand.hbm [shape: f32[2,1,32], index: 20, kind: output, shape index: {}]  }
   0x1   :  { %5883 = sst [smem:[#allocation11_spill]] %s5846_s0 }
   0x2   :  { %5884 = sst [smem:[#allocation12_spill]] %s5847_s1 }
   0x3   :  { %5885 = sst [smem:[#allocation13_spill]] %s5848_s2 }
   0x4   :  { %5886 = sst [smem:[#allocation14_spill]] %s5849_s3 }
   0x5   :  { %5887 = sst [smem:[#allocation15_spill]] %s5850_s4 }
   0x6   :  { %5888 = sst [smem:[#allocation16_spill]] %s5866_s20 }
   0x7   :  { %25 = vsyncpa [#allocation3], 0 }
   0x8   :  { %27 = vsyncpa [#allocation3 + $0x1], 0  ;;  %s5067_s1 = smov 0   ;;  %s5069_s22 = smov 0  }
   0x9   :  { %s5071_s23 = smov 0   ;;  %s5073_s24 = smov 0  }
   0xa LB: > { %5889 = sst [smem:[#allocation5_spill]] %s4937_s1  ;;  %s5088_s2 = sadd.s32 4294967295, %s4949_s24   ;;  %s4949_s24 = sphi %s5073_s24, %s5911_s24   ;;  %s4945_s23 = sphi %s5071_s23, %s5913_s23   ;;  %s4941_s22 = sphi %s5069_s22, %s5915_s22   ;;  %s4937_s1 = sphi %s5067_s1, %s5914_s1  }
   0xb   : > { %5890 = sst [smem:[#allocation6_spill]] %s4945_s23  ;;  %s4065_s25 = sadd.s32 4294967294, %s4949_s24  }
   0xc   : > { %5891 = sst [smem:[#allocation7_spill]] %s4949_s24  ;;  %s5092_s3 = sadd.s32 1, %s4949_s24  }
   0xd   : > { %5892 = sst [smem:[#allocation8_spill]] %s5092_s3  ;;  %s465_s26 = sadd.s32 1, %s4945_s23 }
   0xe   : > { %s462_s27 = ssub.s32 %s4949_s24, %s5092_s3  ;;  %p475_p0 = scmp.ne.s32.totalorder %s4945_s23, %s4941_s22 }
   0xf   : > { %p463_p1 = scmp.eq.s32.totalorder %s462_s27, 0  ;;  %p476_p2 = scmp.eq.s32.totalorder %s5088_s2, 1 }
  0x10   : > { %p481_p3 = scmp.ne.s32.totalorder %s4941_s22, %s4937_s1  ;;  %p482_p4 = scmp.eq.s32.totalorder %s4065_s25, 1 }
  0x11   : > { %s5103_s28 = scalar_select %p463_p1, %s4945_s23, %s465_s26  }
  0x12   : > { %p5105_p5 = por %p476_p2, %p475_p0  ;;  %p5109_p6 = por %p482_p4, %p481_p3 }
  0x13   : > { %5893 = sst [smem:[#allocation9_spill]] %s5103_s28  ;;  %p4068_p7 = scmp.ge.s32.totalorder %s4949_s24, 1 }
  0x14   : > { %s5895_s29 = scalar_select %p5109_p6, 1, 0 }
  0x15   : > { %p565_p8 = scmp.lt.s32.totalorder %s4949_s24, 3 }
  0x16   : > { %5896 = sst [smem:[#allocation10_spill]] %s5895_s29 }
  0x17   : > { %p566_p9 = pnand %p4068_p7, %p565_p8 }
  0x18   : > { %s5897_s21 = sld [smem:[#allocation12_spill]] (!%p566_p9)  ;;  %p622_p10 = scmp.lt.s32.totalorder (!%p566_p9), %s5088_s2, 1 }
  0x19   : > { %569 = sbr.rel (%p566_p9) target bundleno = 8620 (0x21ac), region = 100  ;;  %s5898_s20 = sld [smem:[#allocation11_spill]] (!%p566_p9) }
  0x1a   : > { %s5901_s28 = sld [smem:[#allocation15_spill]] (!%p566_p9)  ;;  %s4954_s25 = smov (!%p566_p9), 64  }
  0x1b   : > { %s4956_s26 = smov (!%p566_p9), 48   ;;  %s5878_s23 = smov (!%p566_p9), 96  }
  0x1c   : > { %s5876_s29 = smov (!%p566_p9), 80   ;;  %s5905_s1 = smov (!%p566_p9), 80  }
  0x1e   : > { %v4683_v0 = vld [vmem:[%s5897_s21 + $0x78] sm:$0xff]   ;;  %v4687_v4 = vld [vmem:[%s5897_s21 + $0x70] sm:$0xff]   ;;  %v4691_v8 = vld [vmem:[%s5897_s21 + $0x68] sm:$0xff]   ;;  %s623_s27 = scalar_select %p622_p10, %s5088_s2, 1  ;;  %vm1159_vm0 = vcmask 520192   ;;  %vm1278_vm1 = vcmask 523264  }
  0x1f   : > { %v4684_v1 = vld [vmem:[%s5897_s21 + $0x38] sm:$0xff]   ;;  %4330 = vmatprep.subr.bf16.mxu0 %v4683_v0  ;;  %v4688_v5 = vld [vmem:[%s5897_s21 + $0x30] sm:$0xff]   ;;  %v4692_v9 = vld [vmem:[%s5897_s21 + $0x28] sm:$0xff]   ;;  %vm4953_vm2 = vmmov 0   ;;  %vm1334_vm3 = vcmask 130048   ;;  %vm1426_vm4 = vcmask 1044480  }
  0x20   : > { %v4685_v2 = vld [vmem:[%s5897_s21 + $0xf8] sm:$0xff]   ;;  %4331 = vmatpush3.bf16.msra.mxu0 %v4684_v1  ;;  %v4689_v6 = vld [vmem:[%s5897_s21 + $0xf0] sm:$0xff]   ;;  %v4693_v10 = vld [vmem:[%s5897_s21 + $0xe8] sm:$0xff]   ;;  %s4633_s0 = smul.u32 24, %s623_s27  ;;  %s5900_s27 = sld [smem:[#allocation14_spill]]  ;;  %vm1410_vm5 = vcmask 36864  }
  0x21   : > { %v4686_v3 = vld [vmem:[%s5897_s21 + $0xb8] sm:$0xff]   ;;  %4352 = vmatprep.subr.bf16.mxu1 %v4685_v2  ;;  %4332 = vmatprep.subr.bf16.mxu0 %v4687_v4  ;;  %v4690_v7 = vld [vmem:[%s5897_s21 + $0xb0] sm:$0xff]   ;;  %v4694_v11 = vld [vmem:[%s5897_s21 + $0xa8] sm:$0xff]   ;;  %vm1422_vm6 = vcmask 39936   ;;  %vm3903_vm7 = vcmask 516096   ;;  %vm3995_vm8 = vcmask 253952  }
  0x22   : > { %4353 = vmatpush3.bf16.msra.mxu1 %v4686_v3  ;;  %v4695_v12 = vld [vmem:[%s5897_s21 + $0x60] sm:$0xff]   ;;  %v4699_v16 = vld [vmem:[%s5897_s21 + $0x58] sm:$0xff]   ;;  %v4703_v20 = vld [vmem:[%s5897_s21 + $0x50] sm:$0xff]   ;;  %s5207_s24 = scalar_lea.vmem %s5898_s20, %s4633_s0  ;;  %s5899_s0 = sld [smem:[#allocation13_spill]] }
  0x23   : > { %4354 = vmatprep.subr.bf16.mxu1 %v4689_v6  ;;  %v4696_v13 = vld [vmem:[%s5897_s21 + $0x20] sm:$0xff]   ;;  %v4700_v17 = vld [vmem:[%s5897_s21 + $0x18] sm:$0xff]   ;;  %v4704_v21 = vld [vmem:[%s5897_s21 + $0x10] sm:$0xff]   ;;  %s5907_s20 = sld [smem:[#allocation16_spill]] }
  0x24   : > { %4333 = vmatpush3.bf16.msra.mxu0 %v4688_v5  ;;  %v4697_v14 = vld [vmem:[%s5897_s21 + $0xe0] sm:$0xff]   ;;  %v4701_v18 = vld [vmem:[%s5897_s21 + $0xd8] sm:$0xff]   ;;  %v4705_v22 = vld [vmem:[%s5897_s21 + $0xd0] sm:$0xff]  }
  0x25   : > { %4334 = vmatprep.subr.bf16.mxu0 %v4691_v8  ;;  %v4698_v15 = vld [vmem:[%s5897_s21 + $0xa0] sm:$0xff]   ;;  %v4702_v19 = vld [vmem:[%s5897_s21 + $0x98] sm:$0xff]   ;;  %v4706_v23 = vld [vmem:[%s5897_s21 + $0x90] sm:$0xff]  }
  0x26   : > { %4355 = vmatpush3.bf16.msra.mxu1 %v4690_v7  ;;  %v4707_v24 = vld [vmem:[%s5897_s21 + $0x48] sm:$0xff]   ;;  %v4711_v28 = vld [vmem:[%s5897_s21 + $0x40] sm:$0xff]   ;;  %v4717_v35 = vld [vmem:[%s5897_s21 + $0x178] sm:$0xff]  }
  0x27   : > { %4356 = vmatprep.subr.bf16.mxu1 %v4693_v10  ;;  %v4708_v25 = vld [vmem:[%s5897_s21 + $0x8] sm:$0xff]   ;;  %v4712_v29 = vld [vmem:[%s5897_s21] sm:$0xff]   ;;  %v4720_v39 = vld [vmem:[%s5897_s21 + $0x138] sm:$0xff]  }
  0x28   : > { %4335 = vmatpush3.bf16.msra.mxu0 %v4692_v9  ;;  %v4709_v26 = vld [vmem:[%s5897_s21 + $0xc8] sm:$0xff]   ;;  %v4713_v30 = vld [vmem:[%s5897_s21 + $0xc0] sm:$0xff]   ;;  %v4721_v40 = vld [vmem:[%s5897_s21 + $0x170] sm:$0xff]  }
  0x29   : > { %4336 = vmatprep.subr.bf16.mxu0 %v4695_v12  ;;  %v4710_v27 = vld [vmem:[%s5897_s21 + $0x88] sm:$0xff]   ;;  %v628_v31 = vld [vmem:[%s5207_s24] sm:$0x77]  ;;  %v4722_v41 = vld [vmem:[%s5897_s21 + $0x130] sm:$0xff]  }
  0x2a   : > { %4357 = vmatpush3.bf16.msra.mxu1 %v4694_v11  ;;  %v4070_v32 = vcombine.low %v628_v31, %v628_v31  ;;  %v4071_v33 = vcombine.high %v628_v31, %v628_v31  ;;  %v4716_v34 = vld [vmem:[%s5897_s21 + $0x80] sm:$0xff]   ;;  %v629_v36 = vld [vmem:[%s5207_s24 + $0x8] sm:$0x77]  ;;  %v4727_v46 = vld [vmem:[%s5897_s21 + $0x158] sm:$0xff]  }
  0x2b   : > { %4358 = vmatprep.subr.bf16.mxu1 %v4697_v14  ;;  %v4072_v37 = vcombine.low %v629_v36, %v629_v36  ;;  %v4073_v38 = vcombine.high %v629_v36, %v629_v36  ;;  %v4723_v42 = vld [vmem:[%s5897_s21 + $0x168] sm:$0xff]   ;;  %v4725_v44 = vld [vmem:[%s5897_s21 + $0x160] sm:$0xff]   ;;  %v4728_v47 = vld [vmem:[%s5897_s21 + $0x118] sm:$0xff]  }
  0x2c   : > { %4337 = vmatpush3.bf16.msra.mxu0 %v4696_v13  ;;  %1069 = vmatprep.mubr.bf16.mxu0 %v4071_v33  ;;  %v4724_v43 = vld [vmem:[%s5897_s21 + $0x128] sm:$0xff]   ;;  %v4726_v45 = vld [vmem:[%s5897_s21 + $0x120] sm:$0xff]   ;;  %v4729_v48 = vld [vmem:[%s5897_s21 + $0x150] sm:$0xff]  }
  0x2d   : > { %4338 = vmatprep.subr.bf16.mxu0 %v4699_v16  ;;  %1109 = vmatprep.mubr.bf16.mxu1 %v4073_v38  ;;  %v630_v49 = vld [vmem:[%s5207_s24 + $0x10] sm:$0x77]  ;;  %v4731_v52 = vld [vmem:[%s5897_s21 + $0x148] sm:$0xff]   ;;  %v4733_v54 = vld [vmem:[%s5897_s21 + $0x140] sm:$0xff]   ;;  %s5880_s24 = smov 32  }
  0x2e   : > { %4359 = vmatpush3.bf16.msra.mxu1 %v4698_v15  ;;  %v4075_v50 = vcombine.high %v630_v49, %v630_v49  ;;  %v4730_v51 = vld [vmem:[%s5897_s21 + $0x110] sm:$0xff]   ;;  %v4732_v53 = vld [vmem:[%s5897_s21 + $0x108] sm:$0xff]   ;;  %v4734_v55 = vld [vmem:[%s5897_s21 + $0x100] sm:$0xff]   ;;  %v4074_v56 = vcombine.low %v630_v49, %v630_v49 }
  0x2f   : > { %4360 = vmatprep.subr.bf16.mxu1 %v4701_v18  ;;  %v727_v2 = vld [vmem:[%s5899_s0] sm:$0x1f]  ;;  %v4739_v33 = vld [vmem:[%s5853_s7 + $0x34] ss:$8 sps:$4 sm:$0xff]   ;;  %v4743_v38 = vld [vmem:[%s5853_s7 + $0x10] ss:$8 sps:$4 sm:$0xff]  }
  0x30   : > { %4339 = vmatpush3.bf16.msra.mxu0 %v4700_v17  ;;  %v4740_v36 = vld [vmem:[%s5853_s7 + $0x20] ss:$8 sps:$4 sm:$0xff]  }
  0x31   : > { %4340 = vmatprep.subr.bf16.mxu0 %v4703_v20 }
  0x32   : > { %4361 = vmatpush3.bf16.msra.mxu1 %v4702_v19 }
  0x33   : > { %4362 = vmatprep.subr.bf16.mxu1 %v4705_v22  ;;  %v4124_v22 = vld [vmem:[%s5900_s27] ss:$0 sm:$0xff]  ;;  %s5875_s27 = smov 16  }
  0x34   : > { %4341 = vmatpush3.bf16.msra.mxu0 %v4704_v21 }
  0x35   : > { %4342 = vmatprep.subr.bf16.mxu0 %v4707_v24  ;;  %v4125_v24 = vld [vmem:[%s5901_s28] ss:$0 sm:$0xff]  ;;  %s5881_s28 = smov 112  }
  0x36   : > { %4363 = vmatpush3.bf16.msra.mxu1 %v4706_v23 }
  0x37   : > { %4364 = vmatprep.subr.bf16.mxu1 %v4709_v26 }
  0x38   : > { %4343 = vmatpush3.bf16.msra.mxu0 %v4708_v25 }
  0x39   : > { %4344 = vmatprep.subr.bf16.mxu0 %v4711_v28 }
  0x3a   : > { %4365 = vmatpush3.bf16.msra.mxu1 %v4710_v27 }
  0x3b   : > { %4366 = vmatprep.subr.bf16.mxu1 %v4713_v30 }
  0x3c   : > { %4345 = vmatpush3.bf16.msra.mxu0 %v4712_v29 }
  0x3d   : > { %4374 = vmatprep.subr.bf16.mxu0 %v4717_v35  ;;  %v4742_v35 = vld [vmem:[%s5853_s7 + $0x24] ss:$8 sps:$4 sm:$0xff]  }
  0x3e   : > { %4367 = vmatpush3.bf16.msra.mxu1 %v4716_v34  ;;  %v4737_v34 = vld [vmem:[%s5853_s7 + $0x30] ss:$8 sps:$4 sm:$0xff]  }
  0x3f   : > { %1070 = vmatmul.mubr.bf16.vlgmr.msra.gmra.mxu0 %v4070_v32  ;;  %1290 = vmatprep.subr.bf16.mxu1 %v4739_v33  ;;  %v4749_v33 = vld [vmem:[%s5855_s9] sm:$0xff]  }
  0x40   : > { %4375 = vmatpush3.bf16.msra.mxu0 %v4720_v39  ;;  %1149 = vmatprep.mubr.bf16.mxu0 %v4075_v50  ;;  %v4748_v39 = vld [vmem:[%s5853_s7 + $0x4] ss:$8 sps:$4 sm:$0xff]  }
  0x41   : > { %1110 = vmatmul.mubr.bf16.vlgmr.msra.gmra.mxu1 %v4072_v37  ;;  %4376 = vmatprep.subr.bf16.mxu0 %v4721_v40  ;;  %v4745_v37 = vld [vmem:[%s5853_s7 + $0x14] ss:$8 sps:$4 sm:$0xff]   ;;  %v4746_v40 = vld [vmem:[%s5853_s7] ss:$8 sps:$4 sm:$0xff]  }
  0x42   : > { %1291 = vmatpush1.bf16.msra.mxu1 %v4737_v34 }
  0x43   : > { %1292 = vmatprep.subr.bf16.mxu1 %v4742_v35 }
  0x44   : > { %4377 = vmatpush3.bf16.msra.mxu0 %v4722_v41  ;;  %v4951_v41 = vmov 0  }
  0x45   : > { %4378 = vmatprep.subr.bf16.mxu0 %v4723_v42  ;;  %1314 = vmatprep.mubr.bf16.mxu1 %v4951_v41 }
  0x46   : > { %1293 = vmatpush1.bf16.msra.mxu1 %v4740_v36 }
  0x47   : > { %1294 = vmatprep.subr.bf16.mxu1 %v4745_v37 }
  0x48   : > { %4379 = vmatpush3.bf16.msra.mxu0 %v4724_v43 }
  0x49   : > { %4380 = vmatprep.subr.bf16.mxu0 %v4725_v44 }
  0x4a   : > { %1295 = vmatpush1.bf16.msra.mxu1 %v4743_v38 }
  0x4b   : > { %1296 = vmatprep.subr.bf16.mxu1 %v4748_v39 }
  0x4c   : > { %4381 = vmatpush3.bf16.msra.mxu0 %v4726_v45 }
  0x4d   : > { %4382 = vmatprep.subr.bf16.mxu0 %v4727_v46  ;;  %v4126_v46 = vld [vmem:[%s5851_s5] ss:$0 sm:$0xff] }
  0x4e   : > { %1297 = vmatpush1.bf16.msra.mxu1 %v4746_v40 }
  0x50   : > { %4383 = vmatpush3.bf16.msra.mxu0 %v4728_v47 }
  0x51   : > { %4384 = vmatprep.subr.bf16.mxu0 %v4729_v48  ;;  %v4127_v48 = vld [vmem:[%s5852_s6] ss:$0 sm:$0xff] }
  0x54   : > { %4385 = vmatpush3.bf16.msra.mxu0 %v4730_v51 }
  0x55   : > { %4386 = vmatprep.subr.bf16.mxu0 %v4731_v52  ;;  %v4952_v52 = vmov 0.0  }
  0x56   : > { %4493 = vmatprep.subr.mxu1 %v4952_v52 }
  0x58   : > { %4387 = vmatpush3.bf16.msra.mxu0 %v4732_v53  ;;  %v1228_v53 = vlaneseq }
  0x59   : > { %4388 = vmatprep.subr.bf16.mxu0 %v4733_v54 }
  0x5a   : > { %v1229_v54 = vshrl.u32 %v1228_v53, 7 }
  0x5c   : > { %4389 = vmatpush3.bf16.msra.mxu0 %v4734_v55  ;;  %v5324_v55 = vsub.s32 0, %v1229_v54 }
  0x5d   : > { %4513 = vmatprep.subr.bf16.mxu0 %v4952_v52 }
  0x5f   : > { %1150 = vmatmul.mubr.bf16.vlgmr.msra.gmra.mxu0 %v4074_v56  ;;  %v1226_v56 = vld [vmem:[%s5854_s8] sm:$0x3] }
  0x60   : > { %4515 = vmatprep.mubr.msk.bf16.mxu0 %vm4953_vm2, %v4952_v52 }
  0xff   : > { %v4346_v57 = vpop.f32.mrf.mxu0 }
 0x101   : > { %v4347_v58 = vpop.f32.mrf.mxu0  ;;  %v4368_v59 = vpop.f32.mrf.mxu1 }
 0x102   : > { %v4348_v1 = vadd.f32 %v4347_v58, %v4346_v57  ;;  %v1231_v57 = vrot.slane %v1226_v56, %v5324_v55 }
 0x103   : > { %v4349_v60 = vpop.f32.mrf.mxu0  ;;  %v4369_v61 = vpop.f32.mrf.mxu1 }
 0x104   : > { %v1072_v3 = vadd.f32 %v4348_v1, %v727_v2  ;;  %v4370_v4 = vadd.f32 %v4369_v61, %v4368_v59 }
 0x105   : > { %v4350_v62 = vpop.f32.mrf.mxu0  ;;  %v4371_v63 = vpop.f32.mrf.mxu1 }
 0x106   : > { %v1112_v7 = vadd.f32 %v4370_v4, %v1072_v3  ;;  %v5336_v63 = vsub.s32 1, %v1229_v54 }
 0x107   : > { %v4372_v0 = vpop.f32.mrf.mxu1 }
 0x108   : > { %v1235_v0 = vrot.slane %v1226_v56, %v5336_v63 }
 0x11f   : > { %v4390_v5 = vpop.f32.mrf.mxu0 }
 0x121   : > { %v4391_v6 = vpop.f32.mrf.mxu0 }
 0x122   : > { %v4392_v8 = vadd.f32 %v4391_v6, %v4390_v5 }
 0x123   : > { %v4393_v9 = vpop.f32.mrf.mxu0 }
 0x124   : > { %v1152_v10 = vadd.f32 %v4392_v8, %v1112_v7 }
 0x125   : > { %v4394_v11 = vpop.f32.mrf.mxu0 }
 0x126   : > { %v1160_v12 = vsel %vm1159_vm0, %v1152_v10, 0.0 }
 0x127   : > { %1161 = vadd.xlane.f32.xlu0 %v1160_v12 }
 0x1b0   : > { %v1162_v13 = vpop.xlane.xlu0 %1161 }
 0x1b1   : > { %v1164_v14 = vmul.f32 0.015625, %v1162_v13 }
 0x1b3   : > { %v1165_v15 = vsub.f32 %v1152_v10, %v1164_v14 }
 0x1b5   : > { %v1166_v16 = vmul.f32 %v1165_v15, %v1165_v15 }
 0x1b7   : > { %v1167_v17 = vsel %vm1159_vm0, %v1166_v16, 0.0 }
 0x1b8   : > { %1168 = vadd.xlane.f32.xlu0 %v1167_v17 }
 0x241   : > { %v1169_v18 = vpop.xlane.xlu0 %1168 }
 0x242   : > { %v1170_v19 = vmul.f32 0.015625, %v1169_v18 }
 0x244   : > { %v1171_v20 = vadd.f32 1e-05, %v1170_v19 }
 0x246   : > { %4829 = vrsqrt.f32 %v1171_v20 }
 0x253   : > { %v4830_v21 = vpop.eup %4829 }
 0x254   : > { %v1173_v23 = vmul.f32 %v4830_v21, %v1165_v15 }
 0x256   : > { %v1180_v25 = vmul.f32 %v4124_v22, %v1173_v23 }
 0x258   : > { %v5280_v26 = vadd.f32 %v4125_v24, %v1180_v25 }
 0x25a   : > { %v1190_v27 = vsel %vm1159_vm0, %v5280_v26, 0.0 }
 0x25b   : > { %1191 = vadd.xlane.f32.xlu1 %v1190_v27 }
 0x2e4   : > { %v1192_v28 = vpop.xlane.xlu1 %1191 }
 0x2e5   : > { %v1193_v29 = vmul.f32 0.015625, %v1192_v28 }
 0x2e7   : > { %v1194_v30 = vsub.f32 %v5280_v26, %v1193_v29  ;;  %v4750_v29 = vld [vmem:[%s5855_s9 + $0x8] sm:$0xff]  }
 0x2e8   : > { %4514 = vmatpush3.bf16.msra.mxu0 %v4750_v29 }
 0x2e9   : > { %v1195_v31 = vmul.f32 %v1194_v30, %v1194_v30  ;;  %4525 = vmatprep.subr.mxu0 %v4952_v52 }
 0x2eb   : > { %v1196_v32 = vsel %vm1159_vm0, %v1195_v31, 0.0 }
 0x2ec   : > { %1197 = vadd.xlane.f32.xlu1 %v1196_v32 }
 0x375   : > { %v1198_v42 = vpop.xlane.xlu1 %1197 }
 0x376   : > { %v1199_v43 = vmul.f32 0.015625, %v1198_v42 }
 0x378   : > { %v1200_v44 = vadd.f32 1e-05, %v1199_v43 }
 0x37a   : > { %4831 = vrsqrt.f32 %v1200_v44 }
 0x387   : > { %v4832_v45 = vpop.eup %4831 }
 0x388   : > { %v1202_v47 = vmul.f32 %v4832_v45, %v1194_v30 }
 0x38a   : > { %v1209_v49 = vmul.f32 %v4126_v46, %v1202_v47 }
 0x38c   : > { %v1216_v50 = vadd.f32 %v4127_v48, %v1209_v49 }
 0x38e   : > { %v1225_v51 = vpack.c.bf16 %v1216_v50, %v1216_v50 }
 0x390   : > { %4136 = vmatmul.mubr.msk.bf16.vlgmr.msra.gmra.mxu1 %vm1278_vm1, %v1225_v51 }
 0x391   : > { %4495 = vmatprep.mubr.msk.f32.mxu1 %vm4953_vm2, %v4952_v52 }
 0x450   : > { %v1316_v58 = vpop.f32.mrf.mxu1 }
 0x451   : > { %v5330_v59 = vadd.f32 %v1316_v58, %v1231_v57 }
 0x452   : > { %v1318_v60 = vpop.f32.mrf.mxu1 }
 0x453   : > { %1332 = vrot.lane.b32.xlu0 %v5330_v59, %s4954_s25  ;;  %v5341_v2 = vadd.f32 %v1318_v60, %v1235_v0 }
 0x454   : > { %v1320_v61 = vpop.f32.mrf.mxu1 }
 0x456   : > { %v1321_v62 = vpop.f32.mrf.mxu1 }
 0x457   : > { %1501 = vrot.lane.b32.xlu0 %v5330_v59, %s5881_s28 }
 0x4c5   : > { %v1333_v1 = vpop.permute.xlu0 %1332 }
 0x4c6   : > { %4494 = vmatpush3.xpose.msk.msra.mxu1 %vm1334_vm3, %v1333_v1 }
 0x4c7   : > { %4498 = vmatprep.subr.mxu1 %v4952_v52 }
 0x4c9   : > { %4496 = vmatmul.mubr.msk.f32.vlgmr.msra.gmra.mxu1 %vm1334_vm3, %v5330_v59  ;;  %v1502_v16 = vpop.permute.xlu0 %1501 }
 0x4ca   : > { %4499 = vmatpush3.msk.msra.mxu1 %vm1426_vm4, %v5341_v2  ;;  %4500 = vmatprep.mubr.msk.f32.mxu1 %vm4953_vm2, %v4952_v52 }
 0x4cb   : > { %4503 = vmatprep.subr.mxu1 %v4952_v52 }
 0x589   : > { %v1405_v3 = vpop.f32.mrf.mxu1 }
 0x58a   : > { %v1409_v4 = vmul.f32 0.25, %v1405_v3 }
 0x58b   : > { %v4497_v5 = vpop.f32.mrf.mxu1 }
 0x58c   : > { %v1411_v6 = vsel %vm1410_vm5, %v1409_v4, -inf }
 0x58d   : > { %1412 = vmax.xlane.f32.xlu1 %v1411_v6 }
 0x616   : > { %v1413_v7 = vpop.xlane.xlu1 %1412 }
 0x617   : > { %v1414_v8 = vsub.f32 %v1409_v4, %v1413_v7 }
 0x619   : > { %v1415_v9 = vmul.f32 1.442695, %v1414_v8 }
 0x61b   : > { %4833 = vpow2.f32 %v1415_v9 }
 0x628   : > { %v4834_v10 = vpop.eup %4833 }
 0x629   : > { %v1417_v11 = vsel %vm1410_vm5, %v4834_v10, 0.0 }
 0x62a   : > { %1418 = vadd.xlane.f32.xlu1 %v1417_v11 }
 0x63b   : > { %1503 = vrot.lane.b32.xlu1 %v5330_v59, %s4956_s26 }
 0x6b3   : > { %v1419_v12 = vpop.xlane.xlu1 %1418 }
 0x6b4   : > { %4835 = vrcp.f32 %v1419_v12 }
 0x6b7   : > { %v1504_v15 = vpop.permute.xlu1 %1503 }
 0x6c1   : > { %v4836_v13 = vpop.eup %4835 }
 0x6c2   : > { %v1421_v14 = vmul.f32 %v4836_v13, %v4834_v10 }
 0x6c4   : > { %4501 = vmatmul.mubr.msk.f32.vlgmr.msra.gmra.mxu1 %vm1422_vm6, %v1421_v14 }
 0x6c5   : > { %4504 = vmatpush3.xpose.msk.msra.mxu1 %vm1334_vm3, %v1504_v15  ;;  %4505 = vmatprep.mubr.msk.f32.mxu1 %vm4953_vm2, %v4952_v52 }
 0x6c6   : > { %4508 = vmatprep.subr.mxu1 %v4952_v52 }
 0x6c8   : > { %4506 = vmatmul.mubr.msk.f32.vlgmr.msra.gmra.mxu1 %vm1334_vm3, %v1502_v16 }
 0x6c9   : > { %4510 = vmatprep.mubr.msk.f32.mxu1 %vm4953_vm2, %v4952_v52 }
 0x784   : > { %v1496_v17 = vpop.f32.mrf.mxu1 }
 0x785   : > { %v1500_v35 = vpack.c.bf16 %v1496_v17, %v1496_v17 }
 0x786   : > { %v4502_v18 = vpop.f32.mrf.mxu1 }
 0x788   : > { %v1575_v19 = vpop.f32.mrf.mxu1 }
 0x789   : > { %v1579_v20 = vmul.f32 0.25, %v1575_v19 }
 0x78a   : > { %v4507_v21 = vpop.f32.mrf.mxu1 }
 0x78b   : > { %v1580_v22 = vsel %vm1410_vm5, %v1579_v20, -inf }
 0x78c   : > { %1581 = vmax.xlane.f32.xlu1 %v1580_v22 }
 0x79d   : > { %1769 = vrot.lane.b32.xlu1 %v5330_v59, %s5880_s24  ;;  %s620_s24 = sand.u32 1, %s4941_s22  }
 0x7a1   : > { %1767 = vrot.lane.b32.xlu1 %v5330_v59, %s5878_s23 }
 0x815   : > { %v1582_v23 = vpop.xlane.xlu1 %1581 }
 0x816   : > { %v1583_v24 = vsub.f32 %v1579_v20, %v1582_v23 }
 0x818   : > { %v1584_v25 = vmul.f32 1.442695, %v1583_v24 }
 0x819   : > { %v1770_v39 = vpop.permute.xlu1 %1769 }
 0x81a   : > { %4837 = vpow2.f32 %v1584_v25 }
 0x81d   : > { %v1768_v44 = vpop.permute.xlu1 %1767 }
 0x827   : > { %v4838_v27 = vpop.eup %4837 }
 0x828   : > { %v1586_v28 = vsel %vm1410_vm5, %v4838_v27, 0.0 }
 0x829   : > { %1587 = vadd.xlane.f32.xlu0 %v1586_v28 }
 0x83f   : > { %1591 = vrot.lane.b32.xlu0 %v5341_v2, %s5881_s28 }
 0x8b2   : > { %v1588_v30 = vpop.xlane.xlu0 %1587 }
 0x8b3   : > { %4839 = vrcp.f32 %v1588_v30 }
 0x8b6   : > { %v1592_v31 = vpop.permute.xlu0 %1591 }
 0x8b7   : > { %4509 = vmatpush3.msk.msra.mxu1 %vm1426_vm4, %v1592_v31 }
 0x8b8   : > { %4519 = vmatprep.subr.bf16.mxu1 %v4952_v52 }
 0x8c0   : > { %v4840_v32 = vpop.eup %4839 }
 0x8c1   : > { %v1590_v34 = vmul.f32 %v4840_v32, %v4838_v27 }
 0x8c3   : > { %4511 = vmatmul.mubr.msk.f32.vlgmr.msra.gmra.mxu1 %vm1422_vm6, %v1590_v34  ;;  %v4161_v34 = vld [vmem:[%s5856_s10] ss:$0 sm:$0xff] }
 0x8c4   : > { %4520 = vmatpush3.bf16.msra.mxu1 %v4749_v33  ;;  %4521 = vmatprep.mubr.msk.bf16.mxu1 %vm4953_vm2, %v4952_v52 }
 0x8c5   : > { %4530 = vmatprep.subr.mxu1 %v4952_v52 }
 0x8c7   : > { %4522 = vmatmul.mubr.msk.bf16.vlgmr.msra.gmra.mxu1 %vm1334_vm3, %v1500_v35 }
 0x8c8   : > { %4532 = vmatprep.mubr.msk.f32.mxu1 %vm4953_vm2, %v4952_v52 }
 0x983   : > { %v1664_v36 = vpop.f32.mrf.mxu1 }
 0x984   : > { %v1668_v37 = vpack.c.bf16 %v1664_v36, %v1664_v36 }
 0x985   : > { %v4512_v38 = vpop.f32.mrf.mxu1 }
 0x986   : > { %4516 = vmatmul.mubr.msk.bf16.vlgmr.msra.gmra.mxu0 %vm1334_vm3, %v1668_v37 }
 0x987   : > { %4526 = vmatpush3.xpose.msk.msra.mxu0 %vm1334_vm3, %v1770_v39  ;;  %v5388_v40 = vpop.f32.mrf.mxu1  ;;  %4527 = vmatprep.mubr.msk.f32.mxu0 %vm4953_vm2, %v4952_v52 }
 0x988   : > { %4535 = vmatprep.subr.bf16.mxu0 %v4952_v52 }
 0x989   : > { %v4523_v42 = vpop.f32.mrf.mxu1 }
 0x98b   : > { %v1764_v43 = vpop.f32.mrf.mxu1 }
 0x98d   : > { %v4524_v45 = vpop.f32.mrf.mxu1 }
 0x98e   : > { %4528 = vmatmul.mubr.msk.f32.vlgmr.msra.gmra.mxu0 %vm1334_vm3, %v1768_v44 }
 0x98f   : > { %4537 = vmatprep.mubr.msk.bf16.mxu0 %vm4953_vm2, %v4952_v52 }
 0xa46   : > { %v1712_v46 = vpop.f32.mrf.mxu0 }
 0xa47   : > { %v1762_v18 = vadd.f32 %v5388_v40, %v1712_v46 }
 0xa48   : > { %v4517_v47 = vpop.f32.mrf.mxu0 }
 0xa49   : > { %v4753_v47 = vld [vmem:[%s5859_s13 + $0x30] ss:$8 sps:$4 sm:$0xff]  }
 0xa4a   : > { %v1715_v48 = vpop.f32.mrf.mxu0 }
 0xa4b   : > { %v4758_v48 = vld [vmem:[%s5859_s13 + $0x24] ss:$8 sps:$4 sm:$0xff]  }
 0xa4c   : > { %v4518_v49 = vpop.f32.mrf.mxu0 }
 0xa4d   : > { %v4756_v49 = vld [vmem:[%s5859_s13 + $0x20] ss:$8 sps:$4 sm:$0xff]  }
 0xa4e   : > { %v1841_v50 = vpop.f32.mrf.mxu0 }
 0xa4f   : > { %v1845_v51 = vmul.f32 0.25, %v1841_v50  ;;  %v4761_v50 = vld [vmem:[%s5859_s13 + $0x14] ss:$8 sps:$4 sm:$0xff]  }
 0xa50   : > { %v4529_v53 = vpop.f32.mrf.mxu0 }
 0xa51   : > { %v1846_v54 = vsel %vm1410_vm5, %v1845_v51, -inf  ;;  %v4764_v53 = vld [vmem:[%s5859_s13 + $0x4] ss:$8 sps:$4 sm:$0xff]  }
 0xa52   : > { %1847 = vmax.xlane.f32.xlu0 %v1846_v54  ;;  %v4762_v54 = vld [vmem:[%s5859_s13] ss:$8 sps:$4 sm:$0xff]  }
 0xa68   : > { %1857 = vrot.lane.b32.xlu0 %v5341_v2, %s5878_s23  ;;  %s5902_s23 = smov 112  }
 0xa6c   : > { %1985 = vrot.lane.b32.xlu0 %v5330_v59, %s5876_s29 }
 0xadb   : > { %v1848_v56 = vpop.xlane.xlu0 %1847 }
 0xadc   : > { %v1849_v57 = vsub.f32 %v1845_v51, %v1848_v56  ;;  %v4759_v51 = vld [vmem:[%s5859_s13 + $0x10] ss:$8 sps:$4 sm:$0xff]  }
 0xade   : > { %v1850_v58 = vmul.f32 1.442695, %v1849_v57 }
 0xadf   : > { %v1858_v60 = vpop.permute.xlu0 %1857 }
 0xae0   : > { %4841 = vpow2.f32 %v1850_v58  ;;  %4531 = vmatpush3.msk.msra.mxu1 %vm1426_vm4, %v1858_v60 }
 0xae1   : > { %4541 = vmatprep.subr.mxu1 %v4952_v52 }
 0xae3   : > { %v1986_v5 = vpop.permute.xlu0 %1985 }
 0xaed   : > { %v4842_v61 = vpop.eup %4841 }
 0xaee   : > { %v1852_v62 = vsel %vm1410_vm5, %v4842_v61, 0.0 }
 0xaef   : > { %1853 = vadd.xlane.f32.xlu1 %v1852_v62 }
 0xb00   : > { %1987 = vrot.lane.b32.xlu1 %v5330_v59, %s5875_s27  ;;  %v4751_v59 = vld [vmem:[%s5855_s9 + $0x10] sm:$0xff]   ;;  %s5906_s27 = smov 16  }
 0xb01   : > { %4536 = vmatpush3.bf16.msra.mxu0 %v4751_v59  ;;  %v4766_v59 = vld [vmem:[%s5861_s15 + $0x38] sm:$0xff]  }
 0xb02   : > { %4551 = vmatprep.subr.bf16.mxu0 %v4952_v52 }
 0xb78   : > { %v1854_v0 = vpop.xlane.xlu1 %1853 }
 0xb79   : > { %4843 = vrcp.f32 %v1854_v0  ;;  %v4163_v0 = vld [vmem:[%s5858_s12] ss:$0 sm:$0xff] }
 0xb7c   : > { %v1988_v4 = vpop.permute.xlu1 %1987 }
 0xb86   : > { %v4844_v1 = vpop.eup %4843 }
 0xb87   : > { %v1856_v3 = vmul.f32 %v4844_v1, %v4842_v61  ;;  %v4162_v61 = vld [vmem:[%s5857_s11] ss:$0 sm:$0xff] }
 0xb89   : > { %4533 = vmatmul.mubr.msk.f32.vlgmr.msra.gmra.mxu1 %vm1422_vm6, %v1856_v3 }
 0xb8a   : > { %4542 = vmatpush3.xpose.msk.msra.mxu1 %vm1334_vm3, %v1988_v4  ;;  %4543 = vmatprep.mubr.msk.f32.mxu1 %vm4953_vm2, %v4952_v52 }
 0xb8b   : > { %4546 = vmatprep.subr.mxu1 %v4952_v52 }
 0xb8d   : > { %4544 = vmatmul.mubr.msk.f32.vlgmr.msra.gmra.mxu1 %vm1334_vm3, %v1986_v5  ;;  %v4765_v5 = vld [vmem:[%s5861_s15 + $0x78] sm:$0xff]  }
 0xb8e   : > { %4548 = vmatprep.mubr.msk.f32.mxu1 %vm4953_vm2, %v4952_v52 }
 0xc49   : > { %v1930_v6 = vpop.f32.mrf.mxu1 }
 0xc4a   : > { %v1934_v7 = vpack.c.bf16 %v1930_v6, %v1930_v6  ;;  %v4767_v6 = vld [vmem:[%s5861_s15 + $0x70] sm:$0xff]  }
 0xc4b   : > { %v4534_v8 = vpop.f32.mrf.mxu1 }
 0xc4c   : > { %4538 = vmatmul.mubr.msk.bf16.vlgmr.msra.gmra.mxu0 %vm1334_vm3, %v1934_v7  ;;  %v4768_v7 = vld [vmem:[%s5861_s15 + $0x30] sm:$0xff]   ;;  %v4769_v8 = vld [vmem:[%s5861_s15 + $0x68] sm:$0xff]  }
 0xc4d   : > { %v2059_v9 = vpop.f32.mrf.mxu1  ;;  %4553 = vmatprep.mubr.msk.bf16.mxu0 %vm4953_vm2, %v4952_v52 }
 0xc4e   : > { %v2063_v10 = vmul.f32 0.25, %v2059_v9  ;;  %v4770_v9 = vld [vmem:[%s5861_s15 + $0x28] sm:$0xff]  }
 0xc4f   : > { %v4545_v11 = vpop.f32.mrf.mxu1 }
 0xc50   : > { %v2064_v12 = vsel %vm1410_vm5, %v2063_v10, -inf  ;;  %v4772_v11 = vld [vmem:[%s5861_s15 + $0x20] sm:$0xff]  }
 0xc51   : > { %2065 = vmax.xlane.f32.xlu1 %v2064_v12  ;;  %v4773_v12 = vld [vmem:[%s5861_s15 + $0x58] sm:$0xff]  }
 0xcda   : > { %v2066_v13 = vpop.xlane.xlu1 %2065 }
 0xcdb   : > { %v2067_v14 = vsub.f32 %v2063_v10, %v2066_v13  ;;  %v4771_v10 = vld [vmem:[%s5861_s15 + $0x60] sm:$0xff]   ;;  %v4774_v13 = vld [vmem:[%s5861_s15 + $0x18] sm:$0xff]  }
 0xcdd   : > { %v2068_v15 = vmul.f32 1.442695, %v2067_v14  ;;  %v4775_v14 = vld [vmem:[%s5861_s15 + $0x50] sm:$0xff]  }
 0xcdf   : > { %4845 = vpow2.f32 %v2068_v15  ;;  %v4776_v15 = vld [vmem:[%s5861_s15 + $0x10] sm:$0xff]  }
 0xcec   : > { %v4846_v16 = vpop.eup %4845 }
 0xced   : > { %v2070_v17 = vsel %vm1410_vm5, %v4846_v16, 0.0 }
 0xcee   : > { %2071 = vadd.xlane.f32.xlu0 %v2070_v17  ;;  %v4778_v17 = vld [vmem:[%s5861_s15 + $0x8] sm:$0xff]  }
 0xd04   : > { %2075 = vrot.lane.b32.xlu0 %v5341_v2, %s5876_s29  ;;  %v4752_v2 = vld [vmem:[%s5855_s9 + $0x18] sm:$0xff]  }
 0xd05   : > { %4552 = vmatpush3.bf16.msra.mxu0 %v4752_v2 }
 0xd06   : > { %4420 = vmatprep.subr.bf16.mxu0 %v4765_v5  ;;  %v4790_v5 = vld [vmem:[%s5853_s7 + $0x40] ss:$8 sps:$4 sm:$0xff]  }
 0xd0c   : > { %v1978_v19 = vpop.f32.mrf.mxu0 }
 0xd0d   : > { %v1984_v20 = vadd.f32 %v1978_v19, %v1762_v18  ;;  %v4779_v18 = vld [vmem:[%s5861_s15 + $0x40] sm:$0xff]  }
 0xd0e   : > { %v4539_v21 = vpop.f32.mrf.mxu0  ;;  %v4780_v19 = vld [vmem:[%s5861_s15] sm:$0xff]  }
 0xd10   : > { %v1981_v22 = vpop.f32.mrf.mxu0 }
 0xd12   : > { %v4540_v23 = vpop.f32.mrf.mxu0 }
 0xd77   : > { %v2072_v24 = vpop.xlane.xlu0 %2071 }
 0xd78   : > { %4847 = vrcp.f32 %v2072_v24 }
 0xd7b   : > { %v2076_v25 = vpop.permute.xlu0 %2075 }
 0xd7c   : > { %4547 = vmatpush3.msk.msra.mxu1 %vm1426_vm4, %v2076_v25 }
 0xd85   : > { %v4848_v27 = vpop.eup %4847 }
 0xd86   : > { %v2074_v28 = vmul.f32 %v4848_v27, %v4846_v16  ;;  %v4777_v16 = vld [vmem:[%s5861_s15 + $0x48] sm:$0xff]  }
 0xd88   : > { %4549 = vmatmul.mubr.msk.f32.vlgmr.msra.gmra.mxu1 %vm1422_vm6, %v2074_v28 }
 0xd89   : > { %2337 = vmatprep.mubr.bf16.mxu1 %v4951_v41 }
 0xe48   : > { %v2148_v29 = vpop.f32.mrf.mxu1 }
 0xe49   : > { %v2152_v30 = vpack.c.bf16 %v2148_v29, %v2148_v29 }
 0xe4a   : > { %v4550_v31 = vpop.f32.mrf.mxu1 }
 0xe4b   : > { %4554 = vmatmul.mubr.msk.bf16.vlgmr.msra.gmra.mxu0 %vm1334_vm3, %v2152_v30 }
 0xe4c   : > { %4421 = vmatpush3.bf16.msra.mxu0 %v4766_v59 }
 0xe4d   : > { %4422 = vmatprep.subr.bf16.mxu0 %v4767_v6 }
 0xe50   : > { %4423 = vmatpush3.bf16.msra.mxu0 %v4768_v7 }
 0xe51   : > { %4424 = vmatprep.subr.bf16.mxu0 %v4769_v8 }
 0xe54   : > { %4425 = vmatpush3.bf16.msra.mxu0 %v4770_v9  ;;  %v4194_v9 = vld [vmem:[%s5851_s5 + $0x1] ss:$0 sm:$0xff] }
 0xe55   : > { %4426 = vmatprep.subr.bf16.mxu0 %v4771_v10 }
 0xe58   : > { %4427 = vmatpush3.bf16.msra.mxu0 %v4772_v11  ;;  %v4195_v11 = vld [vmem:[%s5852_s6 + $0x1] ss:$0 sm:$0xff] }
 0xe59   : > { %4428 = vmatprep.subr.bf16.mxu0 %v4773_v12 }
 0xe5c   : > { %4429 = vmatpush3.bf16.msra.mxu0 %v4774_v13 }
 0xe5d   : > { %4430 = vmatprep.subr.bf16.mxu0 %v4775_v14 }
 0xe60   : > { %4431 = vmatpush3.bf16.msra.mxu0 %v4776_v15  ;;  %v4204_v15 = vld [vmem:[%s5854_s8 + $0x2] sm:$0x3] }
 0xe61   : > { %4432 = vmatprep.subr.bf16.mxu0 %v4777_v16  ;;  %v2588_v16 = vrot.slane %v4204_v15, %v5324_v55 }
 0xe64   : > { %4433 = vmatpush3.bf16.msra.mxu0 %v4778_v17  ;;  %v2592_v17 = vrot.slane %v4204_v15, %v5336_v63 }
 0xe65   : > { %4434 = vmatprep.subr.bf16.mxu0 %v4779_v18 }
 0xe68   : > { %4435 = vmatpush3.bf16.msra.mxu0 %v4780_v19 }
 0xe69   : > { %4562 = vmatprep.subr.mxu0 %v4952_v52 }
 0xf0b   : > { %v2196_v32 = vpop.f32.mrf.mxu0 }
 0xf0c   : > { %v2202_v33 = vadd.f32 %v2196_v32, %v1984_v20  ;;  %v2250_v20 = vld [vmem:[%s5860_s14] sm:$0x3] }
 0xf0d   : > { %v4555_v35 = vpop.f32.mrf.mxu0  ;;  %v2255_v21 = vrot.slane %v2250_v20, %v5324_v55  ;;  %v2259_v22 = vrot.slane %v2250_v20, %v5336_v63 }
 0xf0e   : > { %v2203_v36 = vadd.f32 %v2202_v33, %v5280_v26  ;;  %v4755_v26 = vld [vmem:[%s5859_s13 + $0x34] ss:$8 sps:$4 sm:$0xff]  }
 0xf0f   : > { %v2199_v37 = vpop.f32.mrf.mxu0  ;;  %2313 = vmatprep.subr.bf16.mxu1 %v4755_v26 }
 0xf10   : > { %v5437_v38 = vadd.f32 %v4161_v34, %v2203_v36  ;;  %2314 = vmatpush1.bf16.msra.mxu1 %v4753_v47  ;;  %v4191_v47 = vld [vmem:[%s5862_s16] ss:$0 sm:$0xff] }
 0xf11   : > { %v4556_v39 = vpop.f32.mrf.mxu0  ;;  %2315 = vmatprep.subr.bf16.mxu1 %v4758_v48 }
 0xf12   : > { %v2214_v40 = vsel %vm1159_vm0, %v5437_v38, 0.0 }
 0xf13   : > { %2215 = vadd.xlane.f32.xlu1 %v2214_v40 }
 0xf14   : > { %2316 = vmatpush1.bf16.msra.mxu1 %v4756_v49 }
 0xf15   : > { %2317 = vmatprep.subr.bf16.mxu1 %v4761_v50 }
 0xf18   : > { %2318 = vmatpush1.bf16.msra.mxu1 %v4759_v51 }
 0xf19   : > { %2319 = vmatprep.subr.bf16.mxu1 %v4764_v53 }
 0xf1c   : > { %2320 = vmatpush1.bf16.msra.mxu1 %v4762_v54 }
 0xf9c   : > { %v2216_v42 = vpop.xlane.xlu1 %2215 }
 0xf9d   : > { %v2217_v43 = vmul.f32 0.015625, %v2216_v42 }
 0xf9f   : > { %v2218_v44 = vsub.f32 %v5437_v38, %v2217_v43 }
 0xfa1   : > { %v2219_v45 = vmul.f32 %v2218_v44, %v2218_v44 }
 0xfa3   : > { %v2220_v46 = vsel %vm1159_vm0, %v2219_v45, 0.0 }
 0xfa4   : > { %2221 = vadd.xlane.f32.xlu1 %v2220_v46 }
0x102d   : > { %v2222_v56 = vpop.xlane.xlu1 %2221 }
0x102e   : > { %v2223_v57 = vmul.f32 0.015625, %v2222_v56 }
0x1030   : > { %v2224_v58 = vadd.f32 1e-05, %v2223_v57 }
0x1032   : > { %4849 = vrsqrt.f32 %v2224_v58 }
0x103f   : > { %v4850_v60 = vpop.eup %4849 }
0x1040   : > { %v2226_v62 = vmul.f32 %v4850_v60, %v2218_v44 }
0x1042   : > { %v2233_v1 = vmul.f32 %v4162_v61, %v2226_v62  ;;  %v4783_v61 = vld [vmem:[%s5853_s7 + $0x74] ss:$8 sps:$4 sm:$0xff]   ;;  %v4786_v62 = vld [vmem:[%s5853_s7 + $0x64] ss:$8 sps:$4 sm:$0xff]  }
0x1043   : > { %2646 = vmatprep.subr.bf16.mxu1 %v4783_v61 }
0x1044   : > { %v2240_v3 = vadd.f32 %v4163_v0, %v2233_v1  ;;  %v4784_v0 = vld [vmem:[%s5853_s7 + $0x60] ss:$8 sps:$4 sm:$0xff]   ;;  %v4789_v1 = vld [vmem:[%s5853_s7 + $0x54] ss:$8 sps:$4 sm:$0xff]  }
0x1046   : > { %v2249_v4 = vpack.c.bf16 %v2240_v3, %v2240_v3  ;;  %v4787_v3 = vld [vmem:[%s5853_s7 + $0x50] ss:$8 sps:$4 sm:$0xff]  }
0x1048   : > { %4172 = vmatmul.mubr.msk.bf16.vlgmr.msra.gmra.mxu1 %vm1278_vm1, %v2249_v4  ;;  %v4792_v4 = vld [vmem:[%s5853_s7 + $0x44] ss:$8 sps:$4 sm:$0xff]  }
0x1049   : > { %2670 = vmatprep.mubr.bf16.mxu1 %v4951_v41 }
0x1108   : > { %v2339_v23 = vpop.f32.mrf.mxu1 }
0x1109   : > { %v2340_v24 = vadd.f32 %v2339_v23, %v2255_v21 }
0x110a   : > { %v2341_v25 = vpop.f32.mrf.mxu1 }
0x110b   : > { %v4173_v27 = vmul.f32 -1.702, %v2340_v24  ;;  %v2342_v28 = vadd.f32 %v2341_v25, %v2259_v22 }
0x110c   : > { %v2343_v2 = vpop.f32.mrf.mxu1 }
0x110d   : > { %v2350_v29 = vmul.f32 1.442695, %v4173_v27  ;;  %v4174_v30 = vmul.f32 -1.702, %v2342_v28 }
0x110e   : > { %v2344_v31 = vpop.f32.mrf.mxu1 }
0x110f   : > { %4851 = vpow2.f32 %v2350_v29  ;;  %v2352_v32 = vmul.f32 1.442695, %v4174_v30 }
0x1111   : > { %4853 = vpow2.f32 %v2352_v32 }
0x111c   : > { %v4852_v33 = vpop.eup %4851 }
0x111d   : > { %v2354_v34 = vadd.f32 1.0, %v4852_v33 }
0x111e   : > { %v4854_v35 = vpop.eup %4853 }
0x111f   : > { %4855 = vrcp.f32 %v2354_v34  ;;  %v2355_v36 = vadd.f32 1.0, %v4854_v35 }
0x1121   : > { %4857 = vrcp.f32 %v2355_v36 }
0x112c   : > { %v4856_v37 = vpop.eup %4855 }
0x112d   : > { %v2360_v40 = vmul.f32 %v4856_v37, %v2340_v24 }
0x112e   : > { %v4858_v39 = vpop.eup %4857 }
0x112f   : > { %v2361_v42 = vmul.f32 %v4858_v39, %v2342_v28  ;;  %v2394_v44 = vpack.c.bf16 %v2360_v40, %v2360_v40 }
0x1131   : > { %v2395_v43 = vpack.c.bf16 %v2361_v42, %v2361_v42 }
0x1133   : > { %2524 = vmatprep.mubr.bf16.mxu0 %v2395_v43 }
0x1134   : > { %2525 = vmatmul.mubr.bf16.vlgmr.msra.gmra.mxu0 %v2394_v44 }
0x1135   : > { %4564 = vmatprep.mubr.msk.f32.mxu0 %vm4953_vm2, %v4952_v52 }
0x11f4   : > { %v4436_v45 = vpop.f32.mrf.mxu0 }
0x11f6   : > { %v4437_v46 = vpop.f32.mrf.mxu0 }
0x11f7   : > { %v4438_v26 = vadd.f32 %v4437_v46, %v4436_v45 }
0x11f8   : > { %v4439_v48 = vpop.f32.mrf.mxu0 }
0x11f9   : > { %v2532_v49 = vadd.f32 %v4438_v26, %v5437_v38  ;;  %v4781_v38 = vld [vmem:[%s5853_s7 + $0x70] ss:$8 sps:$4 sm:$0xff]  }
0x11fa   : > { %v4440_v50 = vpop.f32.mrf.mxu0  ;;  %2647 = vmatpush1.bf16.msra.mxu1 %v4781_v38 }
0x11fb   : > { %v5535_v51 = vadd.f32 %v4191_v47, %v2532_v49  ;;  %2648 = vmatprep.subr.bf16.mxu1 %v4786_v62 }
0x11fd   : > { %v2545_v53 = vsel %vm1159_vm0, %v5535_v51, 0.0 }
0x11fe   : > { %2546 = vadd.xlane.f32.xlu1 %v2545_v53  ;;  %2649 = vmatpush1.bf16.msra.mxu1 %v4784_v0 }
0x11ff   : > { %2650 = vmatprep.subr.bf16.mxu1 %v4789_v1 }
0x1202   : > { %2651 = vmatpush1.bf16.msra.mxu1 %v4787_v3 }
0x1203   : > { %2652 = vmatprep.subr.bf16.mxu1 %v4792_v4 }
0x1206   : > { %2653 = vmatpush1.bf16.msra.mxu1 %v4790_v5 }
0x1207   : > { %4557 = vmatprep.subr.mxu1 %v4952_v52 }
0x1287   : > { %v2547_v54 = vpop.xlane.xlu1 %2546 }
0x1288   : > { %v2548_v56 = vmul.f32 0.015625, %v2547_v54 }
0x128a   : > { %v2549_v57 = vsub.f32 %v5535_v51, %v2548_v56  ;;  %v4793_v56 = vld [vmem:[%s5855_s9 + $0x20] sm:$0xff]  }
0x128c   : > { %v2550_v58 = vmul.f32 %v2549_v57, %v2549_v57 }
0x128e   : > { %v2551_v60 = vsel %vm1159_vm0, %v2550_v58, 0.0 }
0x128f   : > { %2552 = vadd.xlane.f32.xlu1 %v2551_v60 }
0x1318   : > { %v2553_v59 = vpop.xlane.xlu1 %2552 }
0x1319   : > { %v2554_v6 = vmul.f32 0.015625, %v2553_v59 }
0x131b   : > { %v2555_v7 = vadd.f32 1e-05, %v2554_v6 }
0x131d   : > { %4859 = vrsqrt.f32 %v2555_v7 }
0x132a   : > { %v4860_v8 = vpop.eup %4859 }
0x132b   : > { %v2557_v10 = vmul.f32 %v4860_v8, %v2549_v57  ;;  %v4794_v57 = vld [vmem:[%s5855_s9 + $0x28] sm:$0xff]  }
0x132d   : > { %v2564_v12 = vmul.f32 %v4194_v9, %v2557_v10 }
0x132f   : > { %v2571_v13 = vadd.f32 %v4195_v11, %v2564_v12 }
0x1331   : > { %v2581_v14 = vpack.c.bf16 %v2571_v13, %v2571_v13 }
0x1333   : > { %4213 = vmatmul.mubr.msk.bf16.vlgmr.msra.gmra.mxu1 %vm1278_vm1, %v2581_v14 }
0x1334   : > { %4559 = vmatprep.mubr.msk.f32.mxu1 %vm4953_vm2, %v4952_v52 }
0x13f3   : > { %v2672_v18 = vpop.f32.mrf.mxu1 }
0x13f4   : > { %v5580_v19 = vadd.f32 %v2672_v18, %v2588_v16 }
0x13f5   : > { %v2674_v20 = vpop.f32.mrf.mxu1 }
0x13f6   : > { %v5582_v21 = vadd.f32 %v2674_v20, %v2592_v17  ;;  %2856 = vrot.lane.b32.xlu0 %v5580_v19, %s4956_s26  ;;  %2689 = vrot.lane.b32.xlu1 %v5580_v19, %s4954_s25  ;;  %s5903_s25 = smov 32   ;;  %s5904_s26 = smov 96  }
0x13f7   : > { %v2676_v22 = vpop.f32.mrf.mxu1 }
0x13f8   : > { %4563 = vmatpush3.msk.msra.mxu0 %vm1426_vm4, %v5582_v21 }
0x13f9   : > { %v2677_v23 = vpop.f32.mrf.mxu1  ;;  %4572 = vmatprep.subr.mxu0 %v4952_v52 }
0x13fa   : > { %2854 = vrot.lane.b32.xlu0 %v5580_v19, %s5902_s23 }
0x1468   : > { %v2690_v24 = vpop.permute.xlu1 %2689  ;;  %v2857_v25 = vpop.permute.xlu0 %2856 }
0x1469   : > { %4558 = vmatpush3.xpose.msk.msra.mxu1 %vm1334_vm3, %v2690_v24 }
0x146a   : > { %4567 = vmatprep.subr.mxu1 %v4952_v52 }
0x146c   : > { %4560 = vmatmul.mubr.msk.f32.vlgmr.msra.gmra.mxu1 %vm1334_vm3, %v5580_v19  ;;  %v2855_v27 = vpop.permute.xlu0 %2854 }
0x146d   : > { %4568 = vmatpush3.xpose.msk.msra.mxu1 %vm1334_vm3, %v2857_v25  ;;  %4569 = vmatprep.mubr.msk.f32.mxu1 %vm4953_vm2, %v4952_v52 }
0x146e   : > { %4577 = vmatprep.subr.bf16.mxu1 %v4952_v52 }
0x1470   : > { %4570 = vmatmul.mubr.msk.f32.vlgmr.msra.gmra.mxu1 %vm1334_vm3, %v2855_v27 }
0x1471   : > { %4579 = vmatprep.mubr.msk.bf16.mxu1 %vm4953_vm2, %v4952_v52  ;;  %4578 = vmatpush3.bf16.msra.mxu1 %v4794_v57 }
0x1472   : > { %4589 = vmatprep.subr.mxu1 %v4952_v52 }
0x152c   : > { %v2761_v28 = vpop.f32.mrf.mxu1 }
0x152d   : > { %v2765_v2 = vmul.f32 0.25, %v2761_v28 }
0x152e   : > { %v4561_v29 = vpop.f32.mrf.mxu1 }
0x152f   : > { %v2766_v30 = vsel %vm1410_vm5, %v2765_v2, -inf }
0x1530   : > { %2767 = vmax.xlane.f32.xlu0 %v2766_v30  ;;  %v2928_v31 = vpop.f32.mrf.mxu1 }
0x1531   : > { %v2932_v32 = vmul.f32 0.25, %v2928_v31 }
0x1532   : > { %v4571_v33 = vpop.f32.mrf.mxu1 }
0x1533   : > { %v2933_v34 = vsel %vm1410_vm5, %v2932_v32, -inf }
0x1534   : > { %2934 = vmax.xlane.f32.xlu1 %v2933_v34 }
0x1545   : > { %3122 = vrot.lane.b32.xlu1 %v5580_v19, %s5903_s25  ;;  %s621_s25 = scalar_lea.vmem [#allocation2], %s620_s24 }
0x1549   : > { %3120 = vrot.lane.b32.xlu1 %v5580_v19, %s5904_s26 }
0x15b9   : > { %v2768_v35 = vpop.xlane.xlu0 %2767 }
0x15ba   : > { %v2769_v36 = vsub.f32 %v2765_v2, %v2768_v35 }
0x15bc   : > { %v2770_v37 = vmul.f32 1.442695, %v2769_v36 }
0x15bd   : > { %v2935_v39 = vpop.xlane.xlu1 %2934 }
0x15be   : > { %4861 = vpow2.f32 %v2770_v37  ;;  %v2936_v40 = vsub.f32 %v2932_v32, %v2935_v39 }
0x15c0   : > { %v2937_v42 = vmul.f32 1.442695, %v2936_v40 }
0x15c1   : > { %v3123_v1 = vpop.permute.xlu1 %3122 }
0x15c2   : > { %4863 = vpow2.f32 %v2937_v42 }
0x15c5   : > { %v3121_v3 = vpop.permute.xlu1 %3120 }
0x15cb   : > { %v4862_v43 = vpop.eup %4861 }
0x15cc   : > { %v2772_v44 = vsel %vm1410_vm5, %v4862_v43, 0.0 }
0x15cd   : > { %2773 = vadd.xlane.f32.xlu0 %v2772_v44 }
0x15cf   : > { %v4864_v45 = vpop.eup %4863 }
0x15d0   : > { %v2939_v46 = vsel %vm1410_vm5, %v4864_v45, 0.0 }
0x15d1   : > { %2940 = vadd.xlane.f32.xlu0 %v2939_v46 }
0x15e7   : > { %2944 = vrot.lane.b32.xlu0 %v5582_v21, %s5902_s23  ;;  %s4327_s23 = sshll.u32 %s5088_s2, 4  ;;  %s4961_s2 = smov [#allocation2]  }
0x15e8   : > { %s5805_s0 = scalar_lea.hbm %s5907_s20, %s4327_s23  ;;  %s4893_s30 = sshll.u32 %s4961_s2, 4  ;;  %s4894_s30 = int_to_ptr.vmem [resolvable:$false] %s4893_s30 }
0x15e9   : > { %s4895_s28 = scalar_lea.vmem %s4894_s30, 32 }
0x1656   : > { %v2774_v26 = vpop.xlane.xlu0 %2773 }
0x1657   : > { %4865 = vrcp.f32 %v2774_v26 }
0x165a   : > { %v2941_v47 = vpop.xlane.xlu0 %2940 }
0x165b   : > { %4867 = vrcp.f32 %v2941_v47 }
0x165e   : > { %v2945_v50 = vpop.permute.xlu0 %2944 }
0x1664   : > { %v4866_v48 = vpop.eup %4865 }
0x1665   : > { %v2776_v49 = vmul.f32 %v4866_v48, %v4862_v43 }
0x1667   : > { %4565 = vmatmul.mubr.msk.f32.vlgmr.msra.gmra.mxu0 %vm1422_vm6, %v2776_v49 }
0x1668   : > { %v4868_v53 = vpop.eup %4867  ;;  %4573 = vmatpush3.msk.msra.mxu0 %vm1426_vm4, %v2945_v50  ;;  %4574 = vmatprep.mubr.msk.f32.mxu0 %vm4953_vm2, %v4952_v52 }
0x1669   : > { %v2943_v54 = vmul.f32 %v4868_v53, %v4864_v45  ;;  %4583 = vmatprep.subr.bf16.mxu0 %v4952_v52 }
0x166b   : > { %4575 = vmatmul.mubr.msk.f32.vlgmr.msra.gmra.mxu0 %vm1422_vm6, %v2943_v54 }
0x166c   : > { %4585 = vmatprep.mubr.msk.bf16.mxu0 %vm4953_vm2, %v4952_v52  ;;  %4584 = vmatpush3.bf16.msra.mxu0 %v4793_v56 }
0x166d   : > { %4594 = vmatprep.subr.mxu0 %v4952_v52 }
0x1727   : > { %v2849_v58 = vpop.f32.mrf.mxu0 }
0x1728   : > { %v2853_v60 = vpack.c.bf16 %v2849_v58, %v2849_v58 }
0x1729   : > { %v4566_v61 = vpop.f32.mrf.mxu0 }
0x172a   : > { %4586 = vmatmul.mubr.msk.bf16.vlgmr.msra.gmra.mxu0 %vm1334_vm3, %v2853_v60  ;;  %v4247_v60 = vld [vmem:[%s5856_s10 + $0x1] ss:$0 sm:$0xff] }
0x172b   : > { %v3017_v38 = vpop.f32.mrf.mxu0  ;;  %4596 = vmatprep.mubr.msk.f32.mxu0 %vm4953_vm2, %v4952_v52 }
0x172c   : > { %v3021_v62 = vpack.c.bf16 %v3017_v38, %v3017_v38 }
0x172d   : > { %v4576_v0 = vpop.f32.mrf.mxu0 }
0x172e   : > { %4580 = vmatmul.mubr.msk.bf16.vlgmr.msra.gmra.mxu1 %vm1334_vm3, %v3021_v62 }
0x172f   : > { %4590 = vmatpush3.xpose.msk.msra.mxu1 %vm1334_vm3, %v3123_v1  ;;  %4591 = vmatprep.mubr.msk.f32.mxu1 %vm4953_vm2, %v4952_v52 }
0x1730   : > { %4599 = vmatprep.subr.bf16.mxu1 %v4952_v52 }
0x1736   : > { %4592 = vmatmul.mubr.msk.f32.vlgmr.msra.gmra.mxu1 %vm1334_vm3, %v3121_v3 }
0x1737   : > { %4601 = vmatprep.mubr.msk.bf16.mxu1 %vm4953_vm2, %v4952_v52 }
0x17ea   : > { %v3114_v4 = vpop.f32.mrf.mxu0 }
0x17ec   : > { %v4587_v5 = vpop.f32.mrf.mxu0 }
0x17ee   : > { %v3065_v59 = vpop.f32.mrf.mxu1  ;;  %v3117_v6 = vpop.f32.mrf.mxu0 }
0x17ef   : > { %v3115_v7 = vadd.f32 %v3114_v4, %v3065_v59 }
0x17f0   : > { %v4581_v8 = vpop.f32.mrf.mxu1  ;;  %v4588_v9 = vpop.f32.mrf.mxu0 }
0x17f1   : > { %v4802_v8 = vld [vmem:[%s5859_s13 + $0x64] ss:$8 sps:$4 sm:$0xff]   ;;  %v4800_v9 = vld [vmem:[%s5859_s13 + $0x60] ss:$8 sps:$4 sm:$0xff]  }
0x17f2   : > { %v3068_v10 = vpop.f32.mrf.mxu1 }
0x17f3   : > { %v4805_v10 = vld [vmem:[%s5859_s13 + $0x54] ss:$8 sps:$4 sm:$0xff]  }
0x17f4   : > { %v4582_v11 = vpop.f32.mrf.mxu1 }
0x17f5   : > { %v4803_v11 = vld [vmem:[%s5859_s13 + $0x50] ss:$8 sps:$4 sm:$0xff]  }
0x17f6   : > { %v3194_v12 = vpop.f32.mrf.mxu1 }
0x17f7   : > { %v3198_v13 = vmul.f32 0.25, %v3194_v12  ;;  %v4808_v12 = vld [vmem:[%s5859_s13 + $0x44] ss:$8 sps:$4 sm:$0xff]  }
0x17f8   : > { %v4593_v14 = vpop.f32.mrf.mxu1 }
0x17f9   : > { %v3199_v15 = vsel %vm1410_vm5, %v3198_v13, -inf }
0x17fa   : > { %3200 = vmax.xlane.f32.xlu0 %v3199_v15 }
0x1810   : > { %3210 = vrot.lane.b32.xlu0 %v5582_v21, %s5904_s26  ;;  %s4010_s26 = sshll.u32 %s621_s25, 4  ;;  %s5807_s26 = int_to_ptr.vmem [resolvable:$true] %s4010_s26 }
0x1811   : > { %p4896_p0 = scmp.lt.s32.totalorder %s5807_s26, %s4894_s30 }
0x1814   : > { %3338 = vrot.lane.b32.xlu0 %v5580_v19, %s5905_s1 }
0x1883   : > { %v3201_v16 = vpop.xlane.xlu0 %3200 }
0x1884   : > { %v3202_v17 = vsub.f32 %v3198_v13, %v3201_v16  ;;  %v4806_v13 = vld [vmem:[%s5859_s13 + $0x40] ss:$8 sps:$4 sm:$0xff]  }
0x1886   : > { %v3203_v18 = vmul.f32 1.442695, %v3202_v17 }
0x1887   : > { %v3211_v20 = vpop.permute.xlu0 %3210 }
0x1888   : > { %4869 = vpow2.f32 %v3203_v18  ;;  %4595 = vmatpush3.msk.msra.mxu0 %vm1426_vm4, %v3211_v20  ;;  %v4250_v18 = vld [vmem:[%s5857_s11 + $0x1] ss:$0 sm:$0xff] }
0x1889   : > { %4605 = vmatprep.subr.mxu0 %v4952_v52 }
0x188b   : > { %v3339_v2 = vpop.permute.xlu0 %3338 }
0x1895   : > { %v4870_v22 = vpop.eup %4869 }
0x1896   : > { %v3205_v23 = vsel %vm1410_vm5, %v4870_v22, 0.0 }
0x1897   : > { %3206 = vadd.xlane.f32.xlu1 %v3205_v23 }
0x18a8   : > { %3340 = vrot.lane.b32.xlu1 %v5580_v19, %s5906_s27  ;;  %v4795_v19 = vld [vmem:[%s5855_s9 + $0x30] sm:$0xff]   ;;  %s4889_s27 = scalar_lea.vmem %s5807_s26, 16 }
0x18a9   : > { %4600 = vmatpush3.bf16.msra.mxu1 %v4795_v19  ;;  %v4812_v19 = vld [vmem:[%s5861_s15 + $0xb0] sm:$0xff]   ;;  %p4890_p11 = scmp.ne.s32.totalorder %s5807_s26, %s4889_s27  ;;  %p4897_p1 = scmp.lt.s32.totalorder %s4895_s28, %s4889_s27 }
0x18aa   : > { %4615 = vmatprep.subr.bf16.mxu1 %v4952_v52 }
0x18ab   : > { %p4891_p12 = pnand %p4890_p11, %p5105_p5  ;;  %p4898_p2 = por %p4897_p1, %p4896_p0 }
0x18ad   : > { %p4892_p13 = pneg %p4891_p12 }
0x18af   : > { %p4899_p3 = pnand %p4898_p2, %p4892_p13 }
0x1920   : > { %v3207_v24 = vpop.xlane.xlu1 %3206 }
0x1921   : > { %4871 = vrcp.f32 %v3207_v24 }
0x1924   : > { %v3341_v28 = vpop.permute.xlu1 %3340 }
0x192e   : > { %v4872_v25 = vpop.eup %4871 }
0x192f   : > { %v3209_v27 = vmul.f32 %v4872_v25, %v4870_v22  ;;  %v4251_v22 = vld [vmem:[%s5858_s12 + $0x1] ss:$0 sm:$0xff] }
0x1931   : > { %4597 = vmatmul.mubr.msk.f32.vlgmr.msra.gmra.mxu0 %vm1422_vm6, %v3209_v27  ;;  %v4809_v27 = vld [vmem:[%s5861_s15 + $0xf8] sm:$0xff]  }
0x1932   : > { %4606 = vmatpush3.xpose.msk.msra.mxu0 %vm1334_vm3, %v3341_v28  ;;  %4607 = vmatprep.mubr.msk.f32.mxu0 %vm4953_vm2, %v4952_v52  ;;  %v4810_v28 = vld [vmem:[%s5861_s15 + $0xb8] sm:$0xff]  }
0x1933   : > { %4610 = vmatprep.subr.mxu0 %v4952_v52 }
0x1935   : > { %4608 = vmatmul.mubr.msk.f32.vlgmr.msra.gmra.mxu0 %vm1334_vm3, %v3339_v2  ;;  %v4811_v2 = vld [vmem:[%s5861_s15 + $0xf0] sm:$0xff]  }
0x1936   : > { %4612 = vmatprep.mubr.msk.f32.mxu0 %vm4953_vm2, %v4952_v52 }
0x19f1   : > { %v3283_v29 = vpop.f32.mrf.mxu0 }
0x19f2   : > { %v3287_v30 = vpack.c.bf16 %v3283_v29, %v3283_v29  ;;  %v4813_v29 = vld [vmem:[%s5861_s15 + $0xe8] sm:$0xff]  }
0x19f3   : > { %v4598_v31 = vpop.f32.mrf.mxu0 }
0x19f4   : > { %4602 = vmatmul.mubr.msk.bf16.vlgmr.msra.gmra.mxu1 %vm1334_vm3, %v3287_v30  ;;  %v4814_v30 = vld [vmem:[%s5861_s15 + $0xa8] sm:$0xff]   ;;  %v4815_v31 = vld [vmem:[%s5861_s15 + $0xe0] sm:$0xff]  }
0x19f5   : > { %v3412_v32 = vpop.f32.mrf.mxu0  ;;  %4617 = vmatprep.mubr.msk.bf16.mxu1 %vm4953_vm2, %v4952_v52 }
0x19f6   : > { %v3416_v33 = vmul.f32 0.25, %v3412_v32  ;;  %v4816_v32 = vld [vmem:[%s5861_s15 + $0xa0] sm:$0xff]  }
0x19f7   : > { %v4609_v34 = vpop.f32.mrf.mxu0 }
0x19f8   : > { %v3417_v35 = vsel %vm1410_vm5, %v3416_v33, -inf  ;;  %v4818_v34 = vld [vmem:[%s5861_s15 + $0x98] sm:$0xff]  }
0x19f9   : > { %3418 = vmax.xlane.f32.xlu1 %v3417_v35  ;;  %v4819_v35 = vld [vmem:[%s5861_s15 + $0xd0] sm:$0xff]  }
0x1a82   : > { %v3419_v36 = vpop.xlane.xlu1 %3418 }
0x1a83   : > { %v3420_v37 = vsub.f32 %v3416_v33, %v3419_v36  ;;  %v4817_v33 = vld [vmem:[%s5861_s15 + $0xd8] sm:$0xff]   ;;  %v4820_v36 = vld [vmem:[%s5861_s15 + $0x90] sm:$0xff]  }
0x1a85   : > { %v3421_v39 = vmul.f32 1.442695, %v3420_v37  ;;  %v4821_v37 = vld [vmem:[%s5861_s15 + $0xc8] sm:$0xff]  }
0x1a87   : > { %4873 = vpow2.f32 %v3421_v39  ;;  %v4822_v39 = vld [vmem:[%s5861_s15 + $0x88] sm:$0xff]  }
0x1a94   : > { %v4874_v40 = vpop.eup %4873 }
0x1a95   : > { %v3423_v42 = vsel %vm1410_vm5, %v4874_v40, 0.0 }
0x1a96   : > { %3424 = vadd.xlane.f32.xlu0 %v3423_v42  ;;  %v4824_v42 = vld [vmem:[%s5861_s15 + $0x80] sm:$0xff]  }
0x1aac   : > { %3428 = vrot.lane.b32.xlu0 %v5582_v21, %s5905_s1  ;;  %v4796_v21 = vld [vmem:[%s5855_s9 + $0x38] sm:$0xff]   ;;  %s3998_s1 = scalar_lea.sflag [#allocation3], %s620_s24 }
0x1aad   : > { %4616 = vmatpush3.bf16.msra.mxu1 %v4796_v21 }
0x1aae   : > { %4466 = vmatprep.subr.bf16.mxu1 %v4809_v27  ;;  %v3902_v27 = vld [vmem:[%s5864_s18] sm:$0x1] }
0x1ab4   : > { %v3331_v43 = vpop.f32.mrf.mxu1 }
0x1ab5   : > { %v3337_v44 = vadd.f32 %v3331_v43, %v3115_v7  ;;  %v4797_v7 = vld [vmem:[%s5859_s13 + $0x70] ss:$8 sps:$4 sm:$0xff]   ;;  %v4260_v43 = vld [vmem:[%s5860_s14 + $0x2] sm:$0x3] }
0x1ab6   : > { %v4603_v45 = vpop.f32.mrf.mxu1 }
0x1ab7   : > { %v3617_v45 = vrot.slane %v4260_v43, %v5336_v63 }
0x1ab8   : > { %v3334_v46 = vpop.f32.mrf.mxu1 }
0x1aba   : > { %v4604_v26 = vpop.f32.mrf.mxu1 }
0x1b1f   : > { %v3425_v47 = vpop.xlane.xlu0 %3424 }
0x1b20   : > { %4875 = vrcp.f32 %v3425_v47 }
0x1b23   : > { %v3429_v48 = vpop.permute.xlu0 %3428 }
0x1b24   : > { %4611 = vmatpush3.msk.msra.mxu0 %vm1426_vm4, %v3429_v48 }
0x1b2d   : > { %v4876_v49 = vpop.eup %4875 }
0x1b2e   : > { %v3427_v50 = vmul.f32 %v4876_v49, %v4874_v40  ;;  %v4823_v40 = vld [vmem:[%s5861_s15 + $0xc0] sm:$0xff]  }
0x1b30   : > { %4613 = vmatmul.mubr.msk.f32.vlgmr.msra.gmra.mxu0 %vm1422_vm6, %v3427_v50 }
0x1b31   : > { %3695 = vmatprep.mubr.bf16.mxu0 %v4951_v41 }
0x1bf0   : > { %v3501_v53 = vpop.f32.mrf.mxu0 }
0x1bf1   : > { %v3505_v54 = vpack.c.bf16 %v3501_v53, %v3501_v53 }
0x1bf2   : > { %v4614_v56 = vpop.f32.mrf.mxu0 }
0x1bf3   : > { %4618 = vmatmul.mubr.msk.bf16.vlgmr.msra.gmra.mxu1 %vm1334_vm3, %v3505_v54 }
0x1bf4   : > { %4467 = vmatpush3.bf16.msra.mxu1 %v4810_v28 }
0x1bf5   : > { %4468 = vmatprep.subr.bf16.mxu1 %v4811_v2 }
0x1bf8   : > { %4469 = vmatpush3.bf16.msra.mxu1 %v4812_v19 }
0x1bf9   : > { %4470 = vmatprep.subr.bf16.mxu1 %v4813_v29 }
0x1bfc   : > { %4471 = vmatpush3.bf16.msra.mxu1 %v4814_v30 }
0x1bfd   : > { %4472 = vmatprep.subr.bf16.mxu1 %v4815_v31 }
0x1c00   : > { %4473 = vmatpush3.bf16.msra.mxu1 %v4816_v32 }
0x1c01   : > { %4474 = vmatprep.subr.bf16.mxu1 %v4817_v33 }
0x1c04   : > { %4475 = vmatpush3.bf16.msra.mxu1 %v4818_v34 }
0x1c05   : > { %4476 = vmatprep.subr.bf16.mxu1 %v4819_v35 }
0x1c08   : > { %4477 = vmatpush3.bf16.msra.mxu1 %v4820_v36 }
0x1c09   : > { %4478 = vmatprep.subr.bf16.mxu1 %v4821_v37 }
0x1c0c   : > { %4479 = vmatpush3.bf16.msra.mxu1 %v4822_v39 }
0x1c0d   : > { %4480 = vmatprep.subr.bf16.mxu1 %v4823_v40 }
0x1c10   : > { %4481 = vmatpush3.bf16.msra.mxu1 %v4824_v42 }
0x1cb3   : > { %v3549_v57 = vpop.f32.mrf.mxu1 }
0x1cb4   : > { %v3555_v58 = vadd.f32 %v3549_v57, %v3337_v44  ;;  %v3613_v44 = vrot.slane %v4260_v43, %v5324_v55 }
0x1cb5   : > { %v4619_v61 = vpop.f32.mrf.mxu1 }
0x1cb6   : > { %v3556_v38 = vadd.f32 %v3555_v58, %v5535_v51  ;;  %v4799_v51 = vld [vmem:[%s5859_s13 + $0x74] ss:$8 sps:$4 sm:$0xff]  }
0x1cb7   : > { %v3552_v41 = vpop.f32.mrf.mxu1  ;;  %3671 = vmatprep.subr.bf16.mxu0 %v4799_v51 }
0x1cb8   : > { %v5681_v62 = vadd.f32 %v4247_v60, %v3556_v38  ;;  %3672 = vmatpush1.bf16.msra.mxu0 %v4797_v7 }
0x1cb9   : > { %v4620_v0 = vpop.f32.mrf.mxu1  ;;  %3673 = vmatprep.subr.bf16.mxu0 %v4802_v8 }
0x1cba   : > { %v3570_v1 = vsel %vm1159_vm0, %v5681_v62, 0.0 }
0x1cbb   : > { %3571 = vadd.xlane.f32.xlu1 %v3570_v1 }
0x1cbc   : > { %3674 = vmatpush1.bf16.msra.mxu0 %v4800_v9 }
0x1cbd   : > { %3675 = vmatprep.subr.bf16.mxu0 %v4805_v10 }
0x1cc0   : > { %3676 = vmatpush1.bf16.msra.mxu0 %v4803_v11 }
0x1cc1   : > { %3677 = vmatprep.subr.bf16.mxu0 %v4808_v12 }
0x1cc4   : > { %3678 = vmatpush1.bf16.msra.mxu0 %v4806_v13 }
0x1cc5   : > { %4621 = vmatprep.subr.bf16.mxu0 %v4952_v52 }
0x1d44   : > { %v3572_v3 = vpop.xlane.xlu1 %3571 }
0x1d45   : > { %v3573_v4 = vmul.f32 0.015625, %v3572_v3 }
0x1d47   : > { %v3574_v5 = vsub.f32 %v5681_v62, %v3573_v4 }
0x1d49   : > { %v3575_v59 = vmul.f32 %v3574_v5, %v3574_v5 }
0x1d4b   : > { %v3576_v6 = vsel %vm1159_vm0, %v3575_v59, 0.0 }
0x1d4c   : > { %3577 = vadd.xlane.f32.xlu1 %v3576_v6  ;;  %v4321_v6 = vld [vmem:[%s5862_s16 + $0x1] ss:$0 sm:$0xff] }
0x1dd5   : > { %v3578_v14 = vpop.xlane.xlu1 %3577 }
0x1dd6   : > { %v3579_v15 = vmul.f32 0.015625, %v3578_v14 }
0x1dd8   : > { %v3580_v16 = vadd.f32 1e-05, %v3579_v15  ;;  %v4825_v15 = vld [vmem:[%s5865_s19 + $0x18] sm:$0xff]  }
0x1dda   : > { %4877 = vrsqrt.f32 %v3580_v16  ;;  %v4827_v16 = vld [vmem:[%s5865_s19 + $0x8] sm:$0xff]  }
0x1de7   : > { %v4878_v17 = vpop.eup %4877 }
0x1de8   : > { %v3582_v20 = vmul.f32 %v4878_v17, %v3574_v5  ;;  %v4828_v17 = vld [vmem:[%s5865_s19] sm:$0xff]  }
0x1dea   : > { %v3589_v23 = vmul.f32 %v4250_v18, %v3582_v20 }
0x1dec   : > { %v3596_v24 = vadd.f32 %v4251_v22, %v3589_v23 }
0x1dee   : > { %v3606_v25 = vpack.c.bf16 %v3596_v24, %v3596_v24  ;;  %v3901_v24 = vld [vmem:[%s5863_s17] sm:$0x1] }
0x1df0   : > { %4269 = vmatmul.mubr.msk.bf16.vlgmr.msra.gmra.mxu0 %vm1278_vm1, %v3606_v25 }
0x1df1   : > { %4629 = vmatprep.mubr.msk.bf16.mxu0 %vm4953_vm2, %v4952_v52  ;;  %4622 = vmatpush3.bf16.msra.mxu0 %v4825_v15 }
0x1df2   : > { %4623 = vmatprep.subr.bf16.mxu0 %v4952_v52 }
0x1eb0   : > { %v3697_v46 = vpop.f32.mrf.mxu0 }
0x1eb1   : > { %v3698_v26 = vadd.f32 %v3697_v46, %v3613_v44 }
0x1eb2   : > { %v3699_v47 = vpop.f32.mrf.mxu0 }
0x1eb3   : > { %v4270_v48 = vmul.f32 -1.702, %v3698_v26  ;;  %v3700_v49 = vadd.f32 %v3699_v47, %v3617_v45 }
0x1eb4   : > { %v3701_v50 = vpop.f32.mrf.mxu0 }
0x1eb5   : > { %v3708_v21 = vmul.f32 1.442695, %v4270_v48  ;;  %v4271_v53 = vmul.f32 -1.702, %v3700_v49 }
0x1eb6   : > { %v3702_v54 = vpop.f32.mrf.mxu0 }
0x1eb7   : > { %4879 = vpow2.f32 %v3708_v21  ;;  %v3710_v56 = vmul.f32 1.442695, %v4271_v53 }
0x1eb9   : > { %4881 = vpow2.f32 %v3710_v56 }
0x1ec4   : > { %v4880_v57 = vpop.eup %4879 }
0x1ec5   : > { %v3712_v58 = vadd.f32 1.0, %v4880_v57 }
0x1ec6   : > { %v4882_v60 = vpop.eup %4881 }
0x1ec7   : > { %4883 = vrcp.f32 %v3712_v58  ;;  %v3713_v61 = vadd.f32 1.0, %v4882_v60 }
0x1ec9   : > { %4885 = vrcp.f32 %v3713_v61 }
0x1ed4   : > { %v4884_v55 = vpop.eup %4883 }
0x1ed5   : > { %v3718_v38 = vmul.f32 %v4884_v55, %v3698_v26 }
0x1ed6   : > { %v4886_v63 = vpop.eup %4885 }
0x1ed7   : > { %v3719_v41 = vmul.f32 %v4886_v63, %v3700_v49  ;;  %v3753_v1 = vpack.c.bf16 %v3718_v38, %v3718_v38 }
0x1ed9   : > { %v3754_v0 = vpack.c.bf16 %v3719_v41, %v3719_v41 }
0x1edb   : > { %3883 = vmatprep.mubr.bf16.mxu1 %v3754_v0 }
0x1edc   : > { %3884 = vmatmul.mubr.bf16.vlgmr.msra.gmra.mxu1 %v3753_v1 }
0x1f9c   : > { %v4482_v3 = vpop.f32.mrf.mxu1 }
0x1f9e   : > { %v4483_v4 = vpop.f32.mrf.mxu1 }
0x1f9f   : > { %v4484_v5 = vadd.f32 %v4483_v4, %v4482_v3 }
0x1fa0   : > { %v4485_v59 = vpop.f32.mrf.mxu1 }
0x1fa1   : > { %v3891_v51 = vadd.f32 %v4484_v5, %v5681_v62  ;;  %v4826_v62 = vld [vmem:[%s5865_s19 + $0x10] sm:$0xff]  }
0x1fa2   : > { %v4486_v7 = vpop.f32.mrf.mxu1  ;;  %4624 = vmatpush3.bf16.msra.mxu0 %v4826_v62 }
0x1fa3   : > { %v3900_v8 = vadd.f32 %v4321_v6, %v3891_v51  ;;  %4625 = vmatprep.subr.bf16.mxu0 %v4952_v52 }
0x1fa5   : > { %v3904_v9 = vsel %vm3903_vm7, %v3900_v8, 0.0 }
0x1fa6   : > { %3905 = vadd.xlane.f32.xlu1 %v3904_v9  ;;  %4626 = vmatpush3.bf16.msra.mxu0 %v4827_v16 }
0x1fa7   : > { %4627 = vmatprep.subr.bf16.mxu0 %v4952_v52 }
0x1faa   : > { %4628 = vmatpush3.bf16.msra.mxu0 %v4828_v17 }
0x202f   : > { %v3906_v10 = vpop.xlane.xlu1 %3905 }
0x2030   : > { %v3907_v11 = vmul.f32 0.015625, %v3906_v10 }
0x2032   : > { %v3908_v12 = vsub.f32 %v3900_v8, %v3907_v11 }
0x2034   : > { %v3909_v13 = vmul.f32 %v3908_v12, %v3908_v12 }
0x2036   : > { %v3910_v14 = vsel %vm3903_vm7, %v3909_v13, 0.0 }
0x2037   : > { %3911 = vadd.xlane.f32.xlu1 %v3910_v14 }
0x20c0   : > { %v3912_v18 = vpop.xlane.xlu1 %3911 }
0x20c1   : > { %v3913_v20 = vmul.f32 0.015625, %v3912_v18 }
0x20c3   : > { %v3914_v22 = vadd.f32 1e-05, %v3913_v20 }
0x20c5   : > { %4887 = vrsqrt.f32 %v3914_v22 }
0x20d2   : > { %v4888_v23 = vpop.eup %4887 }
0x20d3   : > { %v3916_v25 = vmul.f32 %v4888_v23, %v3908_v12 }
0x20d5   : > { %v3917_v28 = vmul.f32 %v3916_v25, %v3901_v24 }
0x20d7   : > { %v3918_v2 = vadd.f32 %v3917_v28, %v3902_v27 }
0x20d9   : > { %v3919_v19 = vpack.c.bf16 %v3918_v2, %v3918_v2 }
0x20db   : > { %4630 = vmatmul.mubr.msk.bf16.vlgmr.msra.gmra.mxu0 %vm1278_vm1, %v3919_v19 }
0x219b   : > { %v3989_v52 = vpop.f32.mrf.mxu0 }
0x219c   : > { %3996 = vst.msk [vmem:[%s621_s25] sm:$0x1] %vm3995_vm8, %v3989_v52 }
0x219d   : > { %v4631_v29 = vpop.f32.mrf.mxu0 }
0x219e   : > { %4902 = shalt.err (!%p4899_p3)
}
0x219f   : > { %s4903_s23 = scalar_lea.hbm %s5805_s0, 16  ;;  %s4907_s29 = scalar_lea.hbm %s5907_s20, 32 }
0x21a0   : > { %p4904_p4 = scmp.ne.s32.totalorder %s5805_s0, %s4903_s23  ;;  %p4908_p9 = scmp.lt.s32.totalorder %s5805_s0, %s5907_s20 }
0x21a1   : > { %p4909_p10 = scmp.lt.s32.totalorder %s4907_s29, %s4903_s23 }
0x21a2   : > { %p4905_p7 = pnand %p4904_p4, %p5105_p5 }
0x21a3   : > { %p4910_p11 = por %p4909_p10, %p4908_p9 }
0x21a4   : > { %p4906_p8 = pneg %p4905_p7 }
0x21a6   : > { %p4911_p12 = pnand %p4910_p11, %p4906_p8 }
0x21a8   : > { %4914 = shalt.err (!%p4911_p12)
}
0x21a9   : > { %4634 = dma.vmem_to_hbm [thread:$0]  (%p5105_p5), %s5807_s26, 16, %s5805_s0, %s3998_s1   ;;  %v3992_v30 = vpop.f32.mrf.mxu0 }
0x21ab   : > { %v4632_v31 = vpop.f32.mrf.mxu0 }
0x21ac PF: > { %s5908_s27 = sld [smem:[#allocation7_spill]] }
0x21ad   : > { %s5909_s30 = sld [smem:[#allocation5_spill]] }
0x21b2   : > { %p4640_p13 = scmp.ge.s32.totalorder %s5908_s27, 2 }
0x21b3   : > { %s4022_s24 = sand.u32 1, %s5909_s30  }
0x21b4   : > { %p4637_p0 = pnand %p4640_p13, %p5109_p6  ;;  %s4023_s23 = scalar_lea.sflag [#allocation3], %s4022_s24 }
0x21b6   : > { %p4638_p1 = pneg %p4637_p0 }
0x21b8   : > { %4932 = dma.done.wait (%p4638_p1), %s4023_s23, 16  }
0x21b9   : > { %4934 = vsyncadd (%p4638_p1), %s4023_s23, 4294967280  ;;  %s5911_s24 = sld [smem:[#allocation8_spill]]  ;;  %s5914_s1 = smov %s4941_s22 }
0x21ba   : > { %s5912_s4 = sld [smem:[#allocation6_spill]] }
0x21bb   : > { %s5913_s23 = sld [smem:[#allocation9_spill]] }
0x21bf   : > { %p30_p5 = scmp.ge.s32.totalorder %s5911_s24, 4  }
0x21c0   : > { %s5915_s22 = smov %s5912_s4 }
0x21c1   :  { %32 = sbr.rel (!%p30_p5) target bundleno = 10 (0xa), region = 147 }
0x21c6   :  { %4027 = vsyncpa [#allocation3], 1 }
0x21c7   :  { %4029 = vsyncpa [#allocation3 + $0x1], 1 }

</bundles_post_ra>
